<compile_context>
chip_gen: v6e
topology: v6e:2x2x1
jax: 0.10.0
libtpu: 0.0.40
codegen_flags: <defaults>
</compile_context>

<pallas_src>
import functools

import jax
import jax.numpy as jnp
from jax.experimental import pallas as pl
from jax.experimental.pallas import tpu as pltpu


def _edge_fdm_kernel(x_ref, w1_ref, w2_ref, out_ref, pad_ref, col_ref,
                     *, Te, Th, Wp, C, C4):
    # x_ref  : (Te, Wp, 4*C)  f32  stripe of pooled-domain rows with a 2-row
    #                              halo each side (zeros outside the image);
    #                              lanes = (k = 2i+j window position, c)
    # w1_ref : (9*C, C)   bf16     im2col conv33 weights, K = (dy*3+dx)*C + cin
    # w2_ref : (9*C, C4)  bf16     im2col conv33_2 weights, columns (k, c)
    # out_ref: (Th, Wp, C4) f32    shuffled conv2 output + residual
    # pad_ref: (Te, Wp+2, C) f32   width-padded scratch shared by both convs
    # col_ref: ((Te-2)*Wp, 9*C) bf16  im2col patch matrix (conv2 uses a prefix)
    f32 = jnp.float32
    H1 = Te - 2                       # rows of c1 / g (1-row halo around output)

    x = x_ref[...]                                            # (Te, Wp, 4C)

    # --- MaxPool2d(2, 2): max over the 4 window positions (lane slices) ---
    p = jnp.maximum(jnp.maximum(x[:, :, 0 * C:1 * C], x[:, :, 1 * C:2 * C]),
                    jnp.maximum(x[:, :, 2 * C:3 * C], x[:, :, 3 * C:4 * C]))

    # --- zero only the 1-wide column halo (row halo is real stripe data).
    # Re-done every step: scratch is per-core, so a first-step-only guard is
    # unsafe under megacore ("parallel") sharding. It's 2 thin stores. ---
    pad_ref[:, 0:1, :] = jnp.zeros((Te, 1, C), f32)
    pad_ref[:, Wp + 1:Wp + 2, :] = jnp.zeros((Te, 1, C), f32)

    def conv3x3(src, rows, w_ref):
        # 3x3, stride 1, no bias. Width padding = zero halo columns of
        # pad_ref; row padding = the extra halo rows already present in src.
        hout = rows - 2
        m = hout * Wp
        pad_ref[0:rows, 1:Wp + 1, :] = src
        for dy in range(3):
            for dx in range(3):
                t = dy * 3 + dx
                col_ref[0:m, t * C:(t + 1) * C] = (
                    pad_ref[dy:dy + hout, dx:dx + Wp, :]
                    .reshape(m, C).astype(jnp.bfloat16))
        # single wide-K MXU matmul, bf16 operands, f32 accumulation
        return jnp.dot(col_ref[0:m, :], w_ref[...],
                       preferred_element_type=jnp.float32)

    c1 = conv3x3(p, Te, w1_ref).reshape(H1, Wp, C)            # rows 1..Te-1
    g = jax.nn.sigmoid(c1) * p[1:Te - 1, :, :]                # sigmoid gate
    c2 = conv3x3(g, H1, w2_ref).reshape(Th, Wp, C4)           # rows 2..Te-2

    # --- fused PixelShuffle + residual: lanes already ordered (k, c) ---
    out_ref[...] = (c2 + x[2:Te - 2, :, :]).astype(out_ref.dtype)


def edge_fdm_forward(x_nchw, w1_pt, w2_pt, *, scale=2, max_stripe=16):
    """x_nchw: (N, C, H, W); w1_pt: (C, C, 3, 3); w2_pt: (C*scale^2, C, 3, 3)."""
    N, C, H, W = x_nchw.shape
    assert H % 2 == 0 and W % 2 == 0, "H and W must be even (2x2 max pool)"
    assert scale == 2, "fused residual assumes PixelShuffle(2) matching the 2x2 pool"
    Hp, Wp = H // 2, W // 2
    C4 = C * scale * scale

    # stripe height over pooled rows: largest divisor of Hp <= max_stripe
    Th = max(d for d in range(1, min(Hp, max_stripe) + 1) if Hp % d == 0)
    S = Hp // Th
    Te = Th + 4                       # 2-row halo each side (two chained 3x3s)

    # ---- glue: NCHW -> (N, Hp, Wp, 4*C) pooled-window slab, lanes = (k, c) ----
    x = jnp.transpose(x_nchw, (0, 2, 3, 1))                     # (N, H, W, C)
    xs = (x.reshape(N, Hp, 2, Wp, 2, C)
            .transpose(0, 1, 3, 2, 4, 5)                        # (N, Hp, Wp, i, j, C)
            .reshape(N, Hp, Wp, 4 * C))                         # k = 2*i + j

    # zero row halo (acts as the convs' zero padding at the image top/bottom),
    # then gather overlapping row stripes -> (N*S, Te, Wp, 4*C)
    xp = jnp.pad(xs, ((0, 0), (2, 2), (0, 0), (0, 0)))
    xstr = jnp.stack([xp[:, s * Th:s * Th + Te] for s in range(S)], axis=1)
    xstr = xstr.reshape(N * S, Te, Wp, 4 * C)

    # conv33 weights: (Cout, Cin, 3, 3) -> (9*C, Cout), K = (dy*3+dx)*C + cin
    w1 = jnp.transpose(w1_pt, (2, 3, 1, 0)).reshape(9 * C, C).astype(jnp.bfloat16)
    # conv33_2 weights: permute output channels so column (k*C + c) holds
    # PyTorch channel (4*c + k); PixelShuffle then becomes a no-op on the
    # kernel's (h, w, k, c) output layout and the residual fuses in-kernel.
    w2 = (jnp.transpose(w2_pt, (2, 3, 1, 0))                    # (3, 3, Cin, C4)
             .reshape(3, 3, C, C, scale, scale)                 # [.., c_out, i, j]
             .transpose(0, 1, 2, 4, 5, 3)                       # [.., i, j, c_out]
             .reshape(9 * C, C4)).astype(jnp.bfloat16)

    kernel = functools.partial(_edge_fdm_kernel, Te=Te, Th=Th, Wp=Wp, C=C, C4=C4)
    y = pl.pallas_call(
        kernel,
        out_shape=jax.ShapeDtypeStruct((N * S, Th, Wp, C4), jnp.float32),
        grid=(N * S,),
        in_specs=[
            pl.BlockSpec((None, Te, Wp, 4 * C), lambda n: (n, 0, 0, 0)),
            pl.BlockSpec((9 * C, C), lambda n: (0, 0)),
            pl.BlockSpec((9 * C, C4), lambda n: (0, 0)),
        ],
        out_specs=pl.BlockSpec((None, Th, Wp, C4), lambda n: (n, 0, 0, 0)),
        scratch_shapes=[
            pltpu.VMEM((Te, Wp + 2, C), jnp.float32),
            pltpu.VMEM(((Te - 2) * Wp, 9 * C), jnp.bfloat16),
        ],
        compiler_params=pltpu.CompilerParams(
            dimension_semantics=("parallel",),
            vmem_limit_bytes=48 * 1024 * 1024),
    )(xstr, w1, w2)

    # ---- glue: (N*S, Th, Wp, 4*C) with lane order (k, c) -> NCHW ----
    out = (y.reshape(N, Hp, Wp, scale, scale, C)
             .transpose(0, 1, 3, 2, 4, 5)                       # (N, Hp, i, Wp, j, C)
             .reshape(N, H, W, C))
    return jnp.transpose(out, (0, 3, 1, 2))


def _reference(x_nchw, w1_pt, w2_pt, *, scale=2):
    """Pure-JAX reference mirroring the PyTorch forward (bf16 conv operands,
    f32 accumulation — same numerics as the kernel's MXU matmuls)."""
    N, C, H, W = x_nchw.shape
    x = jnp.transpose(x_nchw, (0, 2, 3, 1))
    p = jax.lax.reduce_window(x, -jnp.inf, jax.lax.max,
                              (1, 2, 2, 1), (1, 2, 2, 1), 'VALID')
    w1 = jnp.transpose(w1_pt, (2, 3, 1, 0)).astype(jnp.bfloat16)   # HWIO
    w2 = jnp.transpose(w2_pt, (2, 3, 1, 0)).astype(jnp.bfloat16)

    def conv(a, w):
        return jax.lax.conv_general_dilated(
            a.astype(jnp.bfloat16), w, (1, 1), ((1, 1), (1, 1)),
            dimension_numbers=('NHWC', 'HWIO', 'NHWC'),
            preferred_element_type=jnp.float32)

    c1 = conv(p, w1)
    g = jax.nn.sigmoid(c1) * p
    c2 = conv(g, w2)
    Hp, Wp = H // 2, W // 2
    up = (c2.reshape(N, Hp, Wp, C, scale, scale)
            .transpose(0, 1, 4, 2, 5, 3)
            .reshape(N, H, W, C))
    out = up + x
    return jnp.transpose(out, (0, 3, 1, 2))


def _run_case(key, N, C, H, W, scale=2):
    kx, kw1, kw2 = jax.random.split(key, 3)
    x = jax.random.normal(kx, (N, C, H, W), dtype=jnp.float32)
    # PyTorch conv weight layout (Cout, Cin, kh, kw), no bias.
    w1_pt = 0.1 * jax.random.normal(kw1, (C, C, 3, 3), dtype=jnp.float32)
    w2_pt = 0.1 * jax.random.normal(kw2, (C * scale * scale, C, 3, 3),
                                    dtype=jnp.float32)

    out = jax.block_until_ready(edge_fdm_forward(x, w1_pt, w2_pt, scale=scale))
    ref = _reference(x, w1_pt, w2_pt, scale=scale)
    assert out.shape == (N, C, H, W)
    err = float(jnp.max(jnp.abs(out - ref)))
    assert jnp.allclose(out, ref, atol=1e-2, rtol=1e-2), (
        f"max abs err = {err} for shape {(N, C, H, W)}")


if __name__ == "__main__":
    key = jax.random.PRNGKey(0)
    k_small, k_big = jax.random.split(key)

    # Toy config (single stripe): conv33 8->8, conv33_2 8->32, shuffle -> 8.
    _run_case(k_small, N=2, C=8, H=16, W=16)
    # Module's real channel count; Hp=32 -> 2 row stripes (exercises halos).
    _run_case(k_big, N=1, C=64, H=64, W=64)

    print("KERNEL_OK")
</pallas_src>

<mosaic_0001>
module attributes {stable_mosaic.version = 11 : i64} {
  func.func @_edge_fdm_kernel(%arg0: i32, %arg1: memref<1x12x8x32xf32, #tpu.memory_space<vmem>>, %arg2: memref<72x8xbf16, #tpu.memory_space<vmem>>, %arg3: memref<72x32xbf16, #tpu.memory_space<vmem>>, %arg4: memref<1x8x8x32xf32, #tpu.memory_space<vmem>>, %arg5: memref<12x10x8xf32, #tpu.memory_space<vmem>>, %arg6: memref<80x72xbf16, #tpu.memory_space<vmem>>) attributes {dimension_semantics = [#tpu.dimension_semantics<parallel>], iteration_bounds = array<i64: 2>, scalar_prefetch = 0 : i64, scratch_operands = 2 : i64, tpu.core_type = #tpu.core_type<tc>, window_params = [{transform_indices = @transform_0, window_bounds = array<i64: 1, 12, 8, 32>}, {pipeline_mode = #tpu.pipeline_mode<synchronous>, transform_indices = @transform_1, window_bounds = array<i64: 72, 8>}, {pipeline_mode = #tpu.pipeline_mode<synchronous>, transform_indices = @transform_2, window_bounds = array<i64: 72, 32>}, {transform_indices = @transform_3, window_bounds = array<i64: 1, 8, 8, 32>}]} {
    %c0 = arith.constant 0 : index
    %c0_0 = arith.constant 0 : index
    %c0_1 = arith.constant 0 : index
    %c0_2 = arith.constant 0 : index
    %0 = vector.load %arg1[%c0, %c0_0, %c0_1, %c0_2] : memref<1x12x8x32xf32, #tpu.memory_space<vmem>>, vector<1x12x8x32xf32>
    %1 = vector.shape_cast %0 : vector<1x12x8x32xf32> to vector<12x8x32xf32>
    %2 = vector.extract_strided_slice %1 {offsets = [0, 0, 0], sizes = [12, 8, 8], strides = [1, 1, 1]} : vector<12x8x32xf32> to vector<12x8x8xf32>
    %3 = vector.extract_strided_slice %1 {offsets = [0, 0, 8], sizes = [12, 8, 8], strides = [1, 1, 1]} : vector<12x8x32xf32> to vector<12x8x8xf32>
    %4 = arith.maximumf %2, %3 : vector<12x8x8xf32>
    %5 = vector.extract_strided_slice %1 {offsets = [0, 0, 16], sizes = [12, 8, 8], strides = [1, 1, 1]} : vector<12x8x32xf32> to vector<12x8x8xf32>
    %6 = vector.extract_strided_slice %1 {offsets = [0, 0, 24], sizes = [12, 8, 8], strides = [1, 1, 1]} : vector<12x8x32xf32> to vector<12x8x8xf32>
    %7 = arith.maximumf %5, %6 : vector<12x8x8xf32>
    %8 = arith.maximumf %4, %7 : vector<12x8x8xf32>
    %cst = arith.constant 0.000000e+00 : f32
    %9 = vector.broadcast %cst : f32 to vector<12x1x8xf32>
    %c0_3 = arith.constant 0 : index
    %c0_4 = arith.constant 0 : index
    %c0_5 = arith.constant 0 : index
    %10 = vector.load %arg5[%c0_3, %c0_4, %c0_5] : memref<12x10x8xf32, #tpu.memory_space<vmem>>, vector<12x1x8xf32>
    tpu.vector_store %arg5[%c0_3, %c0_4, %c0_5], %9 {strides = array<i32>} : memref<12x10x8xf32, #tpu.memory_space<vmem>>, vector<12x1x8xf32>,
    %cst_6 = arith.constant 0.000000e+00 : f32
    %11 = vector.broadcast %cst_6 : f32 to vector<12x1x8xf32>
    %c0_7 = arith.constant 0 : index
    %c9 = arith.constant 9 : index
    %c0_8 = arith.constant 0 : index
    %12 = vector.load %arg5[%c0_7, %c9, %c0_8] : memref<12x10x8xf32, #tpu.memory_space<vmem>>, vector<12x1x8xf32>
    tpu.vector_store %arg5[%c0_7, %c9, %c0_8], %11 {strides = array<i32>} : memref<12x10x8xf32, #tpu.memory_space<vmem>>, vector<12x1x8xf32>,
    %c0_9 = arith.constant 0 : index
    %c1 = arith.constant 1 : index
    %c0_10 = arith.constant 0 : index
    %13 = vector.load %arg5[%c0_9, %c1, %c0_10] : memref<12x10x8xf32, #tpu.memory_space<vmem>>, vector<12x8x8xf32>
    tpu.vector_store %arg5[%c0_9, %c1, %c0_10], %8 {strides = array<i32>} : memref<12x10x8xf32, #tpu.memory_space<vmem>>, vector<12x8x8xf32>,
    %c0_11 = arith.constant 0 : index
    %c0_12 = arith.constant 0 : index
    %c0_13 = arith.constant 0 : index
    %14 = vector.load %arg5[%c0_11, %c0_12, %c0_13] : memref<12x10x8xf32, #tpu.memory_space<vmem>>, vector<10x8x8xf32>
    %15 = vector.shape_cast %14 : vector<10x8x8xf32> to vector<80x8xf32>
    %16 = arith.truncf %15 : vector<80x8xf32> to vector<80x8xbf16>
    %c0_14 = arith.constant 0 : index
    %c0_15 = arith.constant 0 : index
    %17 = vector.load %arg6[%c0_14, %c0_15] : memref<80x72xbf16, #tpu.memory_space<vmem>>, vector<80x8xbf16>
    tpu.vector_store %arg6[%c0_14, %c0_15], %16 {strides = array<i32>} : memref<80x72xbf16, #tpu.memory_space<vmem>>, vector<80x8xbf16>,
    %c0_16 = arith.constant 0 : index
    %c1_17 = arith.constant 1 : index
    %c0_18 = arith.constant 0 : index
    %18 = vector.load %arg5[%c0_16, %c1_17, %c0_18] : memref<12x10x8xf32, #tpu.memory_space<vmem>>, vector<10x8x8xf32>
    %19 = vector.shape_cast %18 : vector<10x8x8xf32> to vector<80x8xf32>
    %20 = arith.truncf %19 : vector<80x8xf32> to vector<80x8xbf16>
    %c0_19 = arith.constant 0 : index
    %c8 = arith.constant 8 : index
    %21 = vector.load %arg6[%c0_19, %c8] : memref<80x72xbf16, #tpu.memory_space<vmem>>, vector<80x8xbf16>
    tpu.vector_store %arg6[%c0_19, %c8], %20 {strides = array<i32>} : memref<80x72xbf16, #tpu.memory_space<vmem>>, vector<80x8xbf16>,
    %c0_20 = arith.constant 0 : index
    %c2 = arith.constant 2 : index
    %c0_21 = arith.constant 0 : index
    %22 = vector.load %arg5[%c0_20, %c2, %c0_21] : memref<12x10x8xf32, #tpu.memory_space<vmem>>, vector<10x8x8xf32>
    %23 = vector.shape_cast %22 : vector<10x8x8xf32> to vector<80x8xf32>
    %24 = arith.truncf %23 : vector<80x8xf32> to vector<80x8xbf16>
    %c0_22 = arith.constant 0 : index
    %c16 = arith.constant 16 : index
    %25 = vector.load %arg6[%c0_22, %c16] : memref<80x72xbf16, #tpu.memory_space<vmem>>, vector<80x8xbf16>
    tpu.vector_store %arg6[%c0_22, %c16], %24 {strides = array<i32>} : memref<80x72xbf16, #tpu.memory_space<vmem>>, vector<80x8xbf16>,
    %c1_23 = arith.constant 1 : index
    %c0_24 = arith.constant 0 : index
    %c0_25 = arith.constant 0 : index
    %26 = vector.load %arg5[%c1_23, %c0_24, %c0_25] : memref<12x10x8xf32, #tpu.memory_space<vmem>>, vector<10x8x8xf32>
    %27 = vector.shape_cast %26 : vector<10x8x8xf32> to vector<80x8xf32>
    %28 = arith.truncf %27 : vector<80x8xf32> to vector<80x8xbf16>
    %c0_26 = arith.constant 0 : index
    %c24 = arith.constant 24 : index
    %29 = vector.load %arg6[%c0_26, %c24] : memref<80x72xbf16, #tpu.memory_space<vmem>>, vector<80x8xbf16>
    tpu.vector_store %arg6[%c0_26, %c24], %28 {strides = array<i32>} : memref<80x72xbf16, #tpu.memory_space<vmem>>, vector<80x8xbf16>,
    %c1_27 = arith.constant 1 : index
    %c1_28 = arith.constant 1 : index
    %c0_29 = arith.constant 0 : index
    %30 = vector.load %arg5[%c1_27, %c1_28, %c0_29] : memref<12x10x8xf32, #tpu.memory_space<vmem>>, vector<10x8x8xf32>
    %31 = vector.shape_cast %30 : vector<10x8x8xf32> to vector<80x8xf32>
    %32 = arith.truncf %31 : vector<80x8xf32> to vector<80x8xbf16>
    %c0_30 = arith.constant 0 : index
    %c32 = arith.constant 32 : index
    %33 = vector.load %arg6[%c0_30, %c32] : memref<80x72xbf16, #tpu.memory_space<vmem>>, vector<80x8xbf16>
    tpu.vector_store %arg6[%c0_30, %c32], %32 {strides = array<i32>} : memref<80x72xbf16, #tpu.memory_space<vmem>>, vector<80x8xbf16>,
    %c1_31 = arith.constant 1 : index
    %c2_32 = arith.constant 2 : index
    %c0_33 = arith.constant 0 : index
    %34 = vector.load %arg5[%c1_31, %c2_32, %c0_33] : memref<12x10x8xf32, #tpu.memory_space<vmem>>, vector<10x8x8xf32>
    %35 = vector.shape_cast %34 : vector<10x8x8xf32> to vector<80x8xf32>
    %36 = arith.truncf %35 : vector<80x8xf32> to vector<80x8xbf16>
    %c0_34 = arith.constant 0 : index
    %c40 = arith.constant 40 : index
    %37 = vector.load %arg6[%c0_34, %c40] : memref<80x72xbf16, #tpu.memory_space<vmem>>, vector<80x8xbf16>
    tpu.vector_store %arg6[%c0_34, %c40], %36 {strides = array<i32>} : memref<80x72xbf16, #tpu.memory_space<vmem>>, vector<80x8xbf16>,
    %c2_35 = arith.constant 2 : index
    %c0_36 = arith.constant 0 : index
    %c0_37 = arith.constant 0 : index
    %38 = vector.load %arg5[%c2_35, %c0_36, %c0_37] : memref<12x10x8xf32, #tpu.memory_space<vmem>>, vector<10x8x8xf32>
    %39 = vector.shape_cast %38 : vector<10x8x8xf32> to vector<80x8xf32>
    %40 = arith.truncf %39 : vector<80x8xf32> to vector<80x8xbf16>
    %c0_38 = arith.constant 0 : index
    %c48 = arith.constant 48 : index
    %41 = vector.load %arg6[%c0_38, %c48] : memref<80x72xbf16, #tpu.memory_space<vmem>>, vector<80x8xbf16>
    tpu.vector_store %arg6[%c0_38, %c48], %40 {strides = array<i32>} : memref<80x72xbf16, #tpu.memory_space<vmem>>, vector<80x8xbf16>,
    %c2_39 = arith.constant 2 : index
    %c1_40 = arith.constant 1 : index
    %c0_41 = arith.constant 0 : index
    %42 = vector.load %arg5[%c2_39, %c1_40, %c0_41] : memref<12x10x8xf32, #tpu.memory_space<vmem>>, vector<10x8x8xf32>
    %43 = vector.shape_cast %42 : vector<10x8x8xf32> to vector<80x8xf32>
    %44 = arith.truncf %43 : vector<80x8xf32> to vector<80x8xbf16>
    %c0_42 = arith.constant 0 : index
    %c56 = arith.constant 56 : index
    %45 = vector.load %arg6[%c0_42, %c56] : memref<80x72xbf16, #tpu.memory_space<vmem>>, vector<80x8xbf16>
    tpu.vector_store %arg6[%c0_42, %c56], %44 {strides = array<i32>} : memref<80x72xbf16, #tpu.memory_space<vmem>>, vector<80x8xbf16>,
    %c2_43 = arith.constant 2 : index
    %c2_44 = arith.constant 2 : index
    %c0_45 = arith.constant 0 : index
    %46 = vector.load %arg5[%c2_43, %c2_44, %c0_45] : memref<12x10x8xf32, #tpu.memory_space<vmem>>, vector<10x8x8xf32>
    %47 = vector.shape_cast %46 : vector<10x8x8xf32> to vector<80x8xf32>
    %48 = arith.truncf %47 : vector<80x8xf32> to vector<80x8xbf16>
    %c0_46 = arith.constant 0 : index
    %c64 = arith.constant 64 : index
    %49 = vector.load %arg6[%c0_46, %c64] : memref<80x72xbf16, #tpu.memory_space<vmem>>, vector<80x8xbf16>
    tpu.vector_store %arg6[%c0_46, %c64], %48 {strides = array<i32>} : memref<80x72xbf16, #tpu.memory_space<vmem>>, vector<80x8xbf16>,
    %c0_47 = arith.constant 0 : index
    %c0_48 = arith.constant 0 : index
    %50 = vector.load %arg6[%c0_47, %c0_48] : memref<80x72xbf16, #tpu.memory_space<vmem>>, vector<80x72xbf16>
    %c0_49 = arith.constant 0 : index
    %c0_50 = arith.constant 0 : index
    %51 = vector.load %arg2[%c0_49, %c0_50] : memref<72x8xbf16, #tpu.memory_space<vmem>>, vector<72x8xbf16>
    %cst_51 = arith.constant dense<0.000000e+00> : vector<80x8xf32>
    %52 = tpu.matmul %50, %51, %cst_51 {dimension_numbers = #tpu.dot_dimension_numbers<[1], [0], [0], [1], [0, 0, 1, 1], [], []>} : vector<80x72xbf16>, vector<72x8xbf16>, vector<80x8xf32> -> vector<80x8xf32>
    %53 = vector.shape_cast %52 : vector<80x8xf32> to vector<10x8x8xf32>
    %54 = arith.negf %53 : vector<10x8x8xf32>
    %55 = math.exp %54 : vector<10x8x8xf32>
    %cst_52 = arith.constant 1.000000e+00 : f32
    %56 = vector.broadcast %cst_52 : f32 to vector<10x8x8xf32>
    %57 = arith.addf %56, %55 : vector<10x8x8xf32>
    %58 = arith.divf %56, %57 : vector<10x8x8xf32>
    %59 = vector.extract_strided_slice %8 {offsets = [1, 0, 0], sizes = [10, 8, 8], strides = [1, 1, 1]} : vector<12x8x8xf32> to vector<10x8x8xf32>
    %60 = arith.mulf %58, %59 : vector<10x8x8xf32>
    %c0_53 = arith.constant 0 : index
    %c1_54 = arith.constant 1 : index
    %c0_55 = arith.constant 0 : index
    %61 = vector.load %arg5[%c0_53, %c1_54, %c0_55] : memref<12x10x8xf32, #tpu.memory_space<vmem>>, vector<10x8x8xf32>
    tpu.vector_store %arg5[%c0_53, %c1_54, %c0_55], %60 {strides = array<i32>} : memref<12x10x8xf32, #tpu.memory_space<vmem>>, vector<10x8x8xf32>,
    %c0_56 = arith.constant 0 : index
    %c0_57 = arith.constant 0 : index
    %c0_58 = arith.constant 0 : index
    %62 = vector.load %arg5[%c0_56, %c0_57, %c0_58] : memref<12x10x8xf32, #tpu.memory_space<vmem>>, vector<8x8x8xf32>
    %63 = vector.shape_cast %62 : vector<8x8x8xf32> to vector<64x8xf32>
    %64 = arith.truncf %63 : vector<64x8xf32> to vector<64x8xbf16>
    %c0_59 = arith.constant 0 : index
    %c0_60 = arith.constant 0 : index
    %65 = vector.load %arg6[%c0_59, %c0_60] : memref<80x72xbf16, #tpu.memory_space<vmem>>, vector<64x8xbf16>
    tpu.vector_store %arg6[%c0_59, %c0_60], %64 {strides = array<i32>} : memref<80x72xbf16, #tpu.memory_space<vmem>>, vector<64x8xbf16>,
    %c0_61 = arith.constant 0 : index
    %c1_62 = arith.constant 1 : index
    %c0_63 = arith.constant 0 : index
    %66 = vector.load %arg5[%c0_61, %c1_62, %c0_63] : memref<12x10x8xf32, #tpu.memory_space<vmem>>, vector<8x8x8xf32>
    %67 = vector.shape_cast %66 : vector<8x8x8xf32> to vector<64x8xf32>
    %68 = arith.truncf %67 : vector<64x8xf32> to vector<64x8xbf16>
    %c0_64 = arith.constant 0 : index
    %c8_65 = arith.constant 8 : index
    %69 = vector.load %arg6[%c0_64, %c8_65] : memref<80x72xbf16, #tpu.memory_space<vmem>>, vector<64x8xbf16>
    tpu.vector_store %arg6[%c0_64, %c8_65], %68 {strides = array<i32>} : memref<80x72xbf16, #tpu.memory_space<vmem>>, vector<64x8xbf16>,
    %c0_66 = arith.constant 0 : index
    %c2_67 = arith.constant 2 : index
    %c0_68 = arith.constant 0 : index
    %70 = vector.load %arg5[%c0_66, %c2_67, %c0_68] : memref<12x10x8xf32, #tpu.memory_space<vmem>>, vector<8x8x8xf32>
    %71 = vector.shape_cast %70 : vector<8x8x8xf32> to vector<64x8xf32>
    %72 = arith.truncf %71 : vector<64x8xf32> to vector<64x8xbf16>
    %c0_69 = arith.constant 0 : index
    %c16_70 = arith.constant 16 : index
    %73 = vector.load %arg6[%c0_69, %c16_70] : memref<80x72xbf16, #tpu.memory_space<vmem>>, vector<64x8xbf16>
    tpu.vector_store %arg6[%c0_69, %c16_70], %72 {strides = array<i32>} : memref<80x72xbf16, #tpu.memory_space<vmem>>, vector<64x8xbf16>,
    %c1_71 = arith.constant 1 : index
    %c0_72 = arith.constant 0 : index
    %c0_73 = arith.constant 0 : index
    %74 = vector.load %arg5[%c1_71, %c0_72, %c0_73] : memref<12x10x8xf32, #tpu.memory_space<vmem>>, vector<8x8x8xf32>
    %75 = vector.shape_cast %74 : vector<8x8x8xf32> to vector<64x8xf32>
    %76 = arith.truncf %75 : vector<64x8xf32> to vector<64x8xbf16>
    %c0_74 = arith.constant 0 : index
    %c24_75 = arith.constant 24 : index
    %77 = vector.load %arg6[%c0_74, %c24_75] : memref<80x72xbf16, #tpu.memory_space<vmem>>, vector<64x8xbf16>
    tpu.vector_store %arg6[%c0_74, %c24_75], %76 {strides = array<i32>} : memref<80x72xbf16, #tpu.memory_space<vmem>>, vector<64x8xbf16>,
    %c1_76 = arith.constant 1 : index
    %c1_77 = arith.constant 1 : index
    %c0_78 = arith.constant 0 : index
    %78 = vector.load %arg5[%c1_76, %c1_77, %c0_78] : memref<12x10x8xf32, #tpu.memory_space<vmem>>, vector<8x8x8xf32>
    %79 = vector.shape_cast %78 : vector<8x8x8xf32> to vector<64x8xf32>
    %80 = arith.truncf %79 : vector<64x8xf32> to vector<64x8xbf16>
    %c0_79 = arith.constant 0 : index
    %c32_80 = arith.constant 32 : index
    %81 = vector.load %arg6[%c0_79, %c32_80] : memref<80x72xbf16, #tpu.memory_space<vmem>>, vector<64x8xbf16>
    tpu.vector_store %arg6[%c0_79, %c32_80], %80 {strides = array<i32>} : memref<80x72xbf16, #tpu.memory_space<vmem>>, vector<64x8xbf16>,
    %c1_81 = arith.constant 1 : index
    %c2_82 = arith.constant 2 : index
    %c0_83 = arith.constant 0 : index
    %82 = vector.load %arg5[%c1_81, %c2_82, %c0_83] : memref<12x10x8xf32, #tpu.memory_space<vmem>>, vector<8x8x8xf32>
    %83 = vector.shape_cast %82 : vector<8x8x8xf32> to vector<64x8xf32>
    %84 = arith.truncf %83 : vector<64x8xf32> to vector<64x8xbf16>
    %c0_84 = arith.constant 0 : index
    %c40_85 = arith.constant 40 : index
    %85 = vector.load %arg6[%c0_84, %c40_85] : memref<80x72xbf16, #tpu.memory_space<vmem>>, vector<64x8xbf16>
    tpu.vector_store %arg6[%c0_84, %c40_85], %84 {strides = array<i32>} : memref<80x72xbf16, #tpu.memory_space<vmem>>, vector<64x8xbf16>,
    %c2_86 = arith.constant 2 : index
    %c0_87 = arith.constant 0 : index
    %c0_88 = arith.constant 0 : index
    %86 = vector.load %arg5[%c2_86, %c0_87, %c0_88] : memref<12x10x8xf32, #tpu.memory_space<vmem>>, vector<8x8x8xf32>
    %87 = vector.shape_cast %86 : vector<8x8x8xf32> to vector<64x8xf32>
    %88 = arith.truncf %87 : vector<64x8xf32> to vector<64x8xbf16>
    %c0_89 = arith.constant 0 : index
    %c48_90 = arith.constant 48 : index
    %89 = vector.load %arg6[%c0_89, %c48_90] : memref<80x72xbf16, #tpu.memory_space<vmem>>, vector<64x8xbf16>
    tpu.vector_store %arg6[%c0_89, %c48_90], %88 {strides = array<i32>} : memref<80x72xbf16, #tpu.memory_space<vmem>>, vector<64x8xbf16>,
    %c2_91 = arith.constant 2 : index
    %c1_92 = arith.constant 1 : index
    %c0_93 = arith.constant 0 : index
    %90 = vector.load %arg5[%c2_91, %c1_92, %c0_93] : memref<12x10x8xf32, #tpu.memory_space<vmem>>, vector<8x8x8xf32>
    %91 = vector.shape_cast %90 : vector<8x8x8xf32> to vector<64x8xf32>
    %92 = arith.truncf %91 : vector<64x8xf32> to vector<64x8xbf16>
    %c0_94 = arith.constant 0 : index
    %c56_95 = arith.constant 56 : index
    %93 = vector.load %arg6[%c0_94, %c56_95] : memref<80x72xbf16, #tpu.memory_space<vmem>>, vector<64x8xbf16>
    tpu.vector_store %arg6[%c0_94, %c56_95], %92 {strides = array<i32>} : memref<80x72xbf16, #tpu.memory_space<vmem>>, vector<64x8xbf16>,
    %c2_96 = arith.constant 2 : index
    %c2_97 = arith.constant 2 : index
    %c0_98 = arith.constant 0 : index
    %94 = vector.load %arg5[%c2_96, %c2_97, %c0_98] : memref<12x10x8xf32, #tpu.memory_space<vmem>>, vector<8x8x8xf32>
    %95 = vector.shape_cast %94 : vector<8x8x8xf32> to vector<64x8xf32>
    %96 = arith.truncf %95 : vector<64x8xf32> to vector<64x8xbf16>
    %c0_99 = arith.constant 0 : index
    %c64_100 = arith.constant 64 : index
    %97 = vector.load %arg6[%c0_99, %c64_100] : memref<80x72xbf16, #tpu.memory_space<vmem>>, vector<64x8xbf16>
    tpu.vector_store %arg6[%c0_99, %c64_100], %96 {strides = array<i32>} : memref<80x72xbf16, #tpu.memory_space<vmem>>, vector<64x8xbf16>,
    %c0_101 = arith.constant 0 : index
    %c0_102 = arith.constant 0 : index
    %98 = vector.load %arg6[%c0_101, %c0_102] : memref<80x72xbf16, #tpu.memory_space<vmem>>, vector<64x72xbf16>
    %c0_103 = arith.constant 0 : index
    %c0_104 = arith.constant 0 : index
    %99 = vector.load %arg3[%c0_103, %c0_104] : memref<72x32xbf16, #tpu.memory_space<vmem>>, vector<72x32xbf16>
    %cst_105 = arith.constant dense<0.000000e+00> : vector<64x32xf32>
    %100 = tpu.matmul %98, %99, %cst_105 {dimension_numbers = #tpu.dot_dimension_numbers<[1], [0], [0], [1], [0, 0, 1, 1], [], []>} : vector<64x72xbf16>, vector<72x32xbf16>, vector<64x32xf32> -> vector<64x32xf32>
    %101 = vector.shape_cast %100 : vector<64x32xf32> to vector<8x8x32xf32>
    %102 = vector.extract_strided_slice %1 {offsets = [2, 0, 0], sizes = [8, 8, 32], strides = [1, 1, 1]} : vector<12x8x32xf32> to vector<8x8x32xf32>
    %103 = arith.addf %101, %102 : vector<8x8x32xf32>
    %c0_106 = arith.constant 0 : index
    %c0_107 = arith.constant 0 : index
    %c0_108 = arith.constant 0 : index
    %c0_109 = arith.constant 0 : index
    %104 = vector.load %arg4[%c0_106, %c0_107, %c0_108, %c0_109] : memref<1x8x8x32xf32, #tpu.memory_space<vmem>>, vector<1x8x8x32xf32>
    %105 = vector.shape_cast %104 : vector<1x8x8x32xf32> to vector<8x8x32xf32>
    %106 = vector.shape_cast %103 : vector<8x8x32xf32> to vector<1x8x8x32xf32>
    tpu.vector_store %arg4[%c0_106, %c0_107, %c0_108, %c0_109], %106 {strides = array<i32>} : memref<1x8x8x32xf32, #tpu.memory_space<vmem>>, vector<1x8x8x32xf32>,
    return
  }
  func.func @transform_0(%arg0: i32) -> (i32, i32, i32, i32) {
    %c0_i32 = arith.constant 0 : i32
    %c0_i32_0 = arith.constant 0 : i32
    %c0_i32_1 = arith.constant 0 : i32
    %c0_i32_2 = arith.constant 0 : i32
    return %arg0, %c0_i32, %c0_i32_0, %c0_i32_1 : i32, i32, i32, i32
  }
  func.func @transform_1(%arg0: i32) -> (i32, i32) {
    %c0_i32 = arith.constant 0 : i32
    %c0_i32_0 = arith.constant 0 : i32
    %c0_i32_1 = arith.constant 0 : i32
    return %c0_i32, %c0_i32_0 : i32, i32
  }
  func.func @transform_2(%arg0: i32) -> (i32, i32) {
    %c0_i32 = arith.constant 0 : i32
    %c0_i32_0 = arith.constant 0 : i32
    %c0_i32_1 = arith.constant 0 : i32
    return %c0_i32, %c0_i32_0 : i32, i32
  }
  func.func @transform_3(%arg0: i32) -> (i32, i32, i32, i32) {
    %c0_i32 = arith.constant 0 : i32
    %c0_i32_0 = arith.constant 0 : i32
    %c0_i32_1 = arith.constant 0 : i32
    %c0_i32_2 = arith.constant 0 : i32
    return %arg0, %c0_i32, %c0_i32_0, %c0_i32_1 : i32, i32, i32, i32
  }
}

</mosaic_0001>

<bundles_post_ra>
// kernel: tpu_custom_call.1
= control target key start
LH: loop header
LB: loop body
LE: loop exit
PB: predicated region body
PF: predicated region fallthrough
CT: control target
= control target key end

     0   :  { %8 = vsyncpa [#allocation5], 0  ;;  %s3571_s0 = inlined_call_operand.hbm [shape: f32[2,12,8,32], index: 0, kind: input, shape index: {}]   ;;  %s3572_s1 = inlined_call_operand.vmem [shape: bf16[72,8], index: 1, kind: input, shape index: {}]   ;;  %s3573_s2 = inlined_call_operand.vmem [shape: bf16[72,32], index: 2, kind: input, shape index: {}]   ;;  %s3574_s3 = inlined_call_operand.hbm [shape: f32[2,8,8,32], index: 3, kind: output, shape index: {}]  }
   0x1   :  { %10 = vsyncpa [#allocation5 + $0x1], 0 }
   0x2   :  { %11 = vsyncpa [#allocation6], 0 }
   0x3   :  { %13 = vsyncpa [#allocation6 + $0x1], 0  ;;  %s2827_s12 = smov 0   ;;  %s2829_s13 = smov 0  }
   0x4   :  { %s2831_s14 = smov 0   ;;  %s2833_s15 = smov 0  }
   0x5 LB: > { %s2848_s16 = sadd.s32 4294967295, %s2788_s15   ;;  %s2123_s17 = sadd.s32 4294967294, %s2788_s15   ;;  %s2788_s15 = sphi %s2833_s15, %s3588_s15   ;;  %s2784_s14 = sphi %s2831_s14, %s3587_s14   ;;  %s2780_s13 = sphi %s2829_s13, %s3586_s13   ;;  %s2776_s12 = sphi %s2827_s12, %s3585_s12  }
   0x6   : > { %s2852_s18 = sadd.s32 1, %s2788_s15   ;;  %s26_s19 = sadd.s32 1, %s2784_s14 }
   0x7   : > { %s23_s20 = ssub.s32 %s2788_s15, %s2852_s18  ;;  %p33_p0 = scmp.ne.s32.totalorder %s2784_s14, %s2780_s13 }
   0x8   : > { %p24_p1 = scmp.eq.s32.totalorder %s23_s20, 0  ;;  %p34_p2 = scmp.eq.s32.totalorder %s2788_s15, 0 }
   0x9   : > { %p39_p3 = scmp.ne.s32.totalorder %s2780_s13, %s2776_s12  ;;  %p40_p4 = scmp.eq.s32.totalorder %s2848_s16, 0 }
   0xa   : > { %s2864_s21 = scalar_select %p24_p1, %s2784_s14, %s26_s19  }
   0xb   : > { %p35_p5 = por %p34_p2, %p33_p0  ;;  %p2866_p6 = por %p40_p4, %p39_p3 }
   0xc   : > { %p105_p7 = scmp.eq.s32.totalorder %s2848_s16, 1  ;;  %p111_p8 = scmp.eq.s32.totalorder %s2123_s17, 1 }
   0xd   : > { %s3577_s22 = scalar_select %p2866_p6, 1, 0 }
   0xe   : > { %p2580_p10 = scmp.lt.s32.totalorder %s2788_s15, 2  ;;  %p2873_p11 = por %p105_p7, %p33_p0 }
   0xf   : > { %p2877_p12 = por %p111_p8, %p39_p3  ;;  %s137_s25 = sand.u32 1, %s2784_s14  }
  0x10   : > { %s3578_s23 = scalar_select %p2873_p11, 1, 0 }
  0x11   : > { %s3579_s24 = scalar_select %p2877_p12, 1, 0 }
  0x12   : > { %s2566_s26 = smul.u32 1536, %s2788_s15  ;;  %p2888_p13 = pnand %p2580_p10, %p35_p5 }
  0x13   : > { %s2565_s27 = smul.u32 96, %s137_s25  ;;  %s2894_s7 = scalar_lea.sflag [#allocation5], %s137_s25 }
  0x14   : > { %s2886_s30 = scalar_lea.hbm %s3571_s0, %s2566_s26  ;;  %p2698_p1 = pneg %p2888_p13 }
  0x15   : > { %s141_s5 = scalar_lea.vmem [#allocation4], %s2565_s27  ;;  %s2696_s8 = scalar_lea.hbm %s2886_s30, 1536 }
  0x16   : > { %s148_s6 = sshll.u32 %s141_s5, 4  ;;  %p2697_p0 = scmp.ne.s32.totalorder %s2886_s30, %s2696_s8  ;;  %s2892_s6 = int_to_ptr.vmem [resolvable:$true] %s148_s6 }
  0x17   : > { %s2701_s11 = scalar_lea.hbm %s3571_s0, 3072  ;;  %p2702_p4 = scmp.lt.s32.totalorder %s2886_s30, %s3571_s0 }
  0x18   : > { %p2699_p2 = pnand %p2698_p1, %p2697_p0  ;;  %p2703_p5 = scmp.lt.s32.totalorder %s2701_s11, %s2696_s8 }
  0x1a   : > { %p2700_p3 = pneg %p2699_p2  ;;  %p2704_p7 = por %p2703_p5, %p2702_p4 }
  0x1c   : > { %p2705_p8 = pnand %p2704_p7, %p2700_p3 }
  0x1e   : > { %2708 = shalt.err (!%p2705_p8)
}
  0x1f   : > { %s2709_s20 = scalar_lea.vmem %s2892_s6, 1536  ;;  %s2790_s25 = smov [#allocation4]  }
  0x20   : > { %p2710_p10 = scmp.ne.s32.totalorder %s2892_s6, %s2709_s20  ;;  %s2714_s26 = sshll.u32 %s2790_s25, 4  ;;  %s2715_s26 = int_to_ptr.vmem [resolvable:$false] %s2714_s26 }
  0x21   : > { %s2716_s27 = scalar_lea.vmem %s2715_s26, 3072  ;;  %p2717_p2 = scmp.lt.s32.totalorder %s2892_s6, %s2715_s26 }
  0x22   : > { %p2712_p9 = pnand %p2710_p10, %p2698_p1  ;;  %p2718_p12 = scmp.lt.s32.totalorder %s2716_s27, %s2709_s20 }
  0x24   : > { %p2713_p0 = pneg %p2712_p9  ;;  %p2719_p11 = por %p2718_p12, %p2717_p2 }
  0x26   : > { %p2720_p6 = pnand %p2719_p11, %p2713_p0 }
  0x28   : > { %2723 = shalt.err (!%p2720_p6)
}
  0x29   : > { %s2791_s28 = smov 128   ;;  %s2792_s29 = smov 8  }
  0x2a   : > { %2575 = dma.hbm_to_vmem [thread:$0]  (!%p2888_p13), %s2886_s30, 1536, %s2892_s6, %s2894_s7, %s2791_s28, %s2791_s28, %s2792_s29  }
  0x2b   : > { %p2127_p9 = scmp.ge.s32.totalorder %s2788_s15, 1  ;;  %p156_p1 = scmp.lt.s32.totalorder %s2788_s15, 3 }
  0x2d   : > { %p157_p3 = pnand %p2127_p9, %p156_p1 }
  0x2e   : > { %s2918_s5 = sand.u32 (!%p157_p3), 1, %s2780_s13   ;;  %p3581_p6 = scmp.ne.s32.totalorder (!%p157_p3), %s3577_s22, 0 }
  0x2f   : > { %160 = sbr.rel (%p157_p3) target bundleno = 1176 (0x498), region = 32  ;;  %s163_s9 = scalar_lea.sflag (!%p157_p3), [#allocation5], %s2918_s5 }
  0x30   : > { %s2567_s8 = smul.u32 (!%p157_p3), 96, %s2918_s5 }
  0x32   : > { %s2922_s10 = scalar_lea.vmem (!%p157_p3), [#allocation4], %s2567_s8 }
  0x34   : > { %2767 = dma.done.wait (%p3581_p6), %s163_s9, 1536  }
  0x35   : > { %2769 = vsyncadd (%p3581_p6), %s163_s9, 4294965760  ;;  %v190_v0 = vld [vmem:[%s2922_s10] sm:$0xff]  ;;  %v192_v1 = vld [vmem:[%s2922_s10 + $0x10] sm:$0xff]  ;;  %s2793_s30 = smov 120   ;;  %vm322_vm0 = vcmask 57344   ;;  %v2794_v12 = vmov 0.0  }
  0x36   : > { %214 = vrot.lane.b32.xlu0 %v190_v0, %s2793_s30  ;;  %218 = vrot.lane.b32.xlu1 %v192_v1, %s2793_s30  ;;  %v191_v2 = vld [vmem:[%s2922_s10 + $0x8] sm:$0xff]  ;;  %v193_v3 = vld [vmem:[%s2922_s10 + $0x18] sm:$0xff]  ;;  %335 = vst.msk [vmem:[#allocation2 + $0x9] sm:$0x1] %vm322_vm0, %v2794_v12  ;;  %323 = vst.msk [vmem:[#allocation2] sm:$0x1] %vm322_vm0, %v2794_v12 }
  0x37   : > { %v194_v4 = vld [vmem:[%s2922_s10 + $0x20] sm:$0xff]  ;;  %v195_v5 = vld [vmem:[%s2922_s10 + $0x28] sm:$0xff]  ;;  %v196_v6 = vld [vmem:[%s2922_s10 + $0x30] sm:$0xff]  ;;  %324 = vst.msk [vmem:[#allocation2 + $0x10] sm:$0x1] %vm322_vm0, %v2794_v12  ;;  %2516 = vmatprep.subr.bf16.mxu0 %v2794_v12  ;;  %s2795_s22 = smov 112  }
  0x38   : > { %v2936_v7 = vld [vmem:[%s2922_s10 + $0x38] sm:$0xff]  ;;  %v198_v8 = vld [vmem:[%s2922_s10 + $0x40] sm:$0xff]  ;;  %v2941_v9 = vld [vmem:[%s2922_s10 + $0x48] sm:$0xff]  ;;  %325 = vst.msk [vmem:[#allocation2 + $0x20] sm:$0x1] %vm322_vm0, %v2794_v12  ;;  %vm347_vm1 = vcmask 64512  }
  0x39   : > { %v2945_v10 = vld [vmem:[%s2922_s10 + $0x50] sm:$0xff]  ;;  %v2948_v11 = vld [vmem:[%s2922_s10 + $0x58] sm:$0xff]  ;;  %326 = vst.msk [vmem:[#allocation2 + $0x30] sm:$0x1] %vm322_vm0, %v2794_v12  ;;  %327 = vst.msk [vmem:[#allocation2 + $0x40] sm:$0x1] %vm322_vm0, %v2794_v12 }
  0x3a   : > { %216 = vrot.lane.b32.xlu0 %v191_v2, %s2793_s30  ;;  %220 = vrot.lane.b32.xlu1 %v193_v3, %s2793_s30  ;;  %328 = vst.msk [vmem:[#allocation2 + $0x50] sm:$0x1] %vm322_vm0, %v2794_v12  ;;  %329 = vst.msk [vmem:[#allocation2 + $0x60] sm:$0x1] %vm322_vm0, %v2794_v12  ;;  %vm410_vm2 = vcmask 60416   ;;  %s2796_s4 = smov 8  }
  0x3b   : > { %330 = vst.msk [vmem:[#allocation2 + $0x70] sm:$0x1] %vm322_vm0, %v2794_v12  ;;  %331 = vst.msk [vmem:[#allocation2 + $0x80] sm:$0x1] %vm322_vm0, %v2794_v12  ;;  %s2797_s6 = smov 16   ;;  %s2798_s17 = smov 24  }
  0x3c   : > { %332 = vst.msk [vmem:[#allocation2 + $0x90] sm:$0x1] %vm322_vm0, %v2794_v12  ;;  %333 = vst.msk [vmem:[#allocation2 + $0xa0] sm:$0x1] %vm322_vm0, %v2794_v12  ;;  %vm1158_vm3 = vcmask 1043456   ;;  %s2799_s19 = smov 32  }
  0x3d   : > { %334 = vst.msk [vmem:[#allocation2 + $0xb0] sm:$0x1] %vm322_vm0, %v2794_v12  ;;  %336 = vst.msk [vmem:[#allocation2 + $0x19] sm:$0x1] %vm322_vm0, %v2794_v12  ;;  %s2800_s26 = smov 40   ;;  %s2801_s29 = smov 48  }
  0x3e   : > { %222 = vrot.lane.b32.xlu0 %v194_v4, %s2793_s30  ;;  %224 = vrot.lane.b32.xlu1 %v195_v5, %s2793_s30  ;;  %337 = vst.msk [vmem:[#allocation2 + $0x29] sm:$0x1] %vm322_vm0, %v2794_v12  ;;  %338 = vst.msk [vmem:[#allocation2 + $0x39] sm:$0x1] %vm322_vm0, %v2794_v12  ;;  %s2803_s11 = smov 64   ;;  %vm2804_vm4 = vmmov 0  }
  0x3f   : > { %339 = vst.msk [vmem:[#allocation2 + $0x49] sm:$0x1] %vm322_vm0, %v2794_v12  ;;  %340 = vst.msk [vmem:[#allocation2 + $0x59] sm:$0x1] %vm322_vm0, %v2794_v12  ;;  %2526 = vmatprep.mubr.msk.bf16.mxu0 %vm2804_vm4, %v2794_v12  ;;  %vm491_vm5 = vcmask 126016   ;;  %vm572_vm6 = vcmask 191616  }
  0x40   : > { %341 = vst.msk [vmem:[#allocation2 + $0x69] sm:$0x1] %vm322_vm0, %v2794_v12  ;;  %342 = vst.msk [vmem:[#allocation2 + $0x79] sm:$0x1] %vm322_vm0, %v2794_v12  ;;  %vm654_vm7 = vcmask 257216   ;;  %vm735_vm8 = vcmask 322816  }
  0x41   : > { %343 = vst.msk [vmem:[#allocation2 + $0x89] sm:$0x1] %vm322_vm0, %v2794_v12  ;;  %344 = vst.msk [vmem:[#allocation2 + $0x99] sm:$0x1] %vm322_vm0, %v2794_v12  ;;  %vm816_vm9 = vcmask 388416   ;;  %vm898_vm10 = vcmask 454016  }
  0x42   : > { %226 = vrot.lane.b32.xlu0 %v196_v6, %s2793_s30  ;;  %228 = vrot.lane.b32.xlu1 %v2936_v7, %s2793_s30  ;;  %345 = vst.msk [vmem:[#allocation2 + $0xa9] sm:$0x1] %vm322_vm0, %v2794_v12  ;;  %346 = vst.msk [vmem:[#allocation2 + $0xb9] sm:$0x1] %vm322_vm0, %v2794_v12  ;;  %vm979_vm11 = vcmask 519616   ;;  %vm1060_vm12 = vcmask 585216  }
  0x43   : > { %vm1142_vm13 = vcmask 588800   ;;  %vm2027_vm14 = vcmask 261120   ;;  %p3582_p12 = scmp.ne.s32.totalorder %s3578_s23, 0  ;;  %s2805_s28 = smov [#allocation7]  }
  0x44   : > { %s2728_s8 = sshll.u32 %s2805_s28, 4  ;;  %s2729_s8 = int_to_ptr.vmem [resolvable:$false] %s2728_s8 }
  0x45   : > { %s2730_s9 = scalar_lea.vmem %s2729_s8, 2048 }
  0x46   : > { %230 = vrot.lane.b32.xlu0 %v198_v8, %s2793_s30  ;;  %232 = vrot.lane.b32.xlu1 %v2941_v9, %s2793_s30 }
  0x4a   : > { %234 = vrot.lane.b32.xlu0 %v2945_v10, %s2793_s30  ;;  %236 = vrot.lane.b32.xlu1 %v2948_v11, %s2793_s30  ;;  %s2802_s30 = smov 56  }
  0xa8   : > { %v215_v13 = vpop.permute.xlu0 %214  ;;  %v219_v14 = vpop.permute.xlu1 %218 }
  0xa9   : > { %v250_v15 = vmax.f32 %v190_v0, %v215_v13  ;;  %v252_v16 = vmax.f32 %v192_v1, %v219_v14 }
  0xab   : > { %274 = vrot.lane.b32.xlu0 %v250_v15, %s2795_s22 }
  0xac   : > { %v217_v17 = vpop.permute.xlu0 %216  ;;  %v221_v18 = vpop.permute.xlu1 %220 }
  0xad   : > { %v251_v19 = vmax.f32 %v191_v2, %v217_v17  ;;  %v253_v20 = vmax.f32 %v193_v3, %v221_v18 }
  0xaf   : > { %278 = vrot.lane.b32.xlu0 %v252_v16, %s2795_s22  ;;  %276 = vrot.lane.b32.xlu1 %v251_v19, %s2795_s22 }
  0xb0   : > { %v223_v21 = vpop.permute.xlu0 %222  ;;  %v225_v22 = vpop.permute.xlu1 %224 }
  0xb1   : > { %v254_v23 = vmax.f32 %v194_v4, %v223_v21  ;;  %v255_v24 = vmax.f32 %v195_v5, %v225_v22 }
  0xb3   : > { %280 = vrot.lane.b32.xlu1 %v253_v20, %s2795_s22  ;;  %282 = vrot.lane.b32.xlu0 %v254_v23, %s2795_s22 }
  0xb4   : > { %v227_v25 = vpop.permute.xlu0 %226  ;;  %v229_v26 = vpop.permute.xlu1 %228 }
  0xb5   : > { %v256_v27 = vmax.f32 %v196_v6, %v227_v25  ;;  %v257_v28 = vmax.f32 %v2936_v7, %v229_v26 }
  0xb7   : > { %284 = vrot.lane.b32.xlu1 %v255_v24, %s2795_s22  ;;  %286 = vrot.lane.b32.xlu0 %v256_v27, %s2795_s22 }
  0xb8   : > { %v231_v29 = vpop.permute.xlu0 %230  ;;  %v233_v30 = vpop.permute.xlu1 %232 }
  0xb9   : > { %v258_v31 = vmax.f32 %v198_v8, %v231_v29  ;;  %v3012_v32 = vmax.f32 %v2941_v9, %v233_v30  ;;  %v2631_v30 = vld [vmem:[%s3572_s1 + $0x10] sm:$0xff]  }
  0xbb   : > { %288 = vrot.lane.b32.xlu1 %v257_v28, %s2795_s22  ;;  %290 = vrot.lane.b32.xlu0 %v258_v31, %s2795_s22 }
  0xbc   : > { %v235_v33 = vpop.permute.xlu0 %234  ;;  %v237_v34 = vpop.permute.xlu1 %236 }
  0xbd   : > { %v3015_v35 = vmax.f32 %v2945_v10, %v235_v33  ;;  %v3022_v36 = vmax.f32 %v2948_v11, %v237_v34  ;;  %v2629_v11 = vld [vmem:[%s3572_s1 + $0x20] ss:$0 sps:$4 sm:$0xff]   ;;  %v2632_v34 = vld [vmem:[%s3572_s1 + $0x8] sm:$0xff]  }
  0xbf   : > { %292 = vrot.lane.b32.xlu1 %v3012_v32, %s2795_s22  ;;  %294 = vrot.lane.b32.xlu0 %v3015_v35, %s2795_s22 }
  0xc3   : > { %296 = vrot.lane.b32.xlu1 %v3022_v36, %s2795_s22 }
 0x11d   : > { %v275_v37 = vpop.permute.xlu0 %274 }
 0x11e   : > { %v310_v38 = vmax.f32 %v250_v15, %v275_v37 }
 0x120   : > { %348 = vst.msk [vmem:[#allocation2 + $0x1] sm:$0xff] %vm347_vm1, %v310_v38 }
 0x121   : > { %v277_v39 = vpop.permute.xlu1 %276  ;;  %v279_v40 = vpop.permute.xlu0 %278 }
 0x122   : > { %v3027_v41 = vmax.f32 %v251_v19, %v277_v39  ;;  %v3029_v42 = vmax.f32 %v252_v16, %v279_v40  ;;  %v1160_v16 = vsel %vm1158_vm3, %v2629_v11, 0 }
 0x123   : > { %2517 = vmatpush3.bf16.msra.mxu0 %v1160_v16 }
 0x124   : > { %349 = vst.msk [vmem:[#allocation2 + $0x11] sm:$0xff] %vm347_vm1, %v3027_v41  ;;  %350 = vst.msk [vmem:[#allocation2 + $0x21] sm:$0xff] %vm347_vm1, %v3029_v42  ;;  %2518 = vmatprep.subr.bf16.mxu0 %v2794_v12 }
 0x125   : > { %v281_v43 = vpop.permute.xlu1 %280  ;;  %v283_v44 = vpop.permute.xlu0 %282 }
 0x126   : > { %v3035_v45 = vmax.f32 %v253_v20, %v281_v43  ;;  %v3037_v46 = vmax.f32 %v254_v23, %v283_v44  ;;  %v2630_v23 = vld [vmem:[%s3572_s1 + $0x18] sm:$0xff]  }
 0x127   : > { %v421_v47 = vld [vmem:[#allocation2 + $0x1] sm:$0xff]  ;;  %2519 = vmatpush3.bf16.msra.mxu0 %v2630_v23 }
 0x128   : > { %v360_v48 = vld [vmem:[#allocation2] sm:$0xff]  ;;  %351 = vst.msk [vmem:[#allocation2 + $0x31] sm:$0xff] %vm347_vm1, %v3035_v45  ;;  %352 = vst.msk [vmem:[#allocation2 + $0x41] sm:$0xff] %vm347_vm1, %v3037_v46  ;;  %v2344_v49 = vpack.c.bf16 %v421_v47, %v421_v47  ;;  %2520 = vmatprep.subr.bf16.mxu0 %v2794_v12 }
 0x129   : > { %v2334_v50 = vpack.c.bf16 %v360_v48, %v360_v48  ;;  %v285_v51 = vpop.permute.xlu1 %284  ;;  %v287_v52 = vpop.permute.xlu0 %286  ;;  %v502_v53 = vld [vmem:[#allocation2 + $0x2] sm:$0xff] }
 0x12a   : > { %v3043_v54 = vmax.f32 %v255_v24, %v285_v51  ;;  %v3045_v55 = vmax.f32 %v256_v27, %v287_v52  ;;  %461 = vrot.lane.b32.xlu0 %v2344_v49, %s2796_s4  ;;  %v2354_v59 = vpack.c.bf16 %v502_v53, %v502_v53 }
 0x12b   : > { %411 = vst.msk [vmem:[#allocation3] sm:$0xf] %vm410_vm2, %v2334_v50  ;;  %v422_v56 = vld [vmem:[#allocation2 + $0x11] sm:$0xff]  ;;  %v585_v61 = vld [vmem:[#allocation2 + $0x20] sm:$0xff]  ;;  %2521 = vmatpush3.bf16.msra.mxu0 %v2631_v30 }
 0x12c   : > { %v584_v57 = vld [vmem:[#allocation2 + $0x10] sm:$0xff]  ;;  %353 = vst.msk [vmem:[#allocation2 + $0x51] sm:$0xff] %vm347_vm1, %v3043_v54  ;;  %354 = vst.msk [vmem:[#allocation2 + $0x61] sm:$0xff] %vm347_vm1, %v3045_v55  ;;  %v2345_v58 = vpack.c.bf16 %v422_v56, %v422_v56  ;;  %v3053_v1 = vpack.c.bf16 %v585_v61, %v585_v61  ;;  %v666_v20 = vld [vmem:[#allocation2 + $0x21] sm:$0xff]  ;;  %2522 = vmatprep.subr.bf16.mxu0 %v2794_v12 }
 0x12d   : > { %v2364_v60 = vpack.c.bf16 %v584_v57, %v584_v57  ;;  %v289_v62 = vpop.permute.xlu1 %288  ;;  %v291_v63 = vpop.permute.xlu0 %290  ;;  %v503_v0 = vld [vmem:[#allocation2 + $0x12] sm:$0xff]  ;;  %v2375_v25 = vpack.c.bf16 %v666_v20, %v666_v20 }
 0x12e   : > { %v3055_v2 = vmax.f32 %v257_v28, %v289_v62  ;;  %v3057_v3 = vmax.f32 %v258_v31, %v291_v63  ;;  %463 = vrot.lane.b32.xlu1 %v2345_v58, %s2796_s4  ;;  %542 = vrot.lane.b32.xlu0 %v2354_v59, %s2797_s6  ;;  %413 = vst.msk [vmem:[#allocation3 + $0x8] sm:$0xf] %vm410_vm2, %v3053_v1  ;;  %v747_v28 = vld [vmem:[#allocation2 + $0x22] sm:$0xff] }
 0x12f   : > { %412 = vst.msk [vmem:[#allocation3 + $0x4] sm:$0xf] %vm410_vm2, %v2364_v60  ;;  %v829_v4 = vld [vmem:[#allocation2 + $0x30] sm:$0xff]  ;;  %v2355_v5 = vpack.c.bf16 %v503_v0, %v503_v0  ;;  %v587_v7 = vld [vmem:[#allocation2 + $0x40] sm:$0xff]  ;;  %2523 = vmatpush3.bf16.msra.mxu0 %v2632_v34 }
 0x130   : > { %355 = vst.msk [vmem:[#allocation2 + $0x71] sm:$0xff] %vm347_vm1, %v3055_v2  ;;  %356 = vst.msk [vmem:[#allocation2 + $0x81] sm:$0xff] %vm347_vm1, %v3057_v3  ;;  %v3068_v6 = vpack.c.bf16 %v829_v4, %v829_v4  ;;  %v3070_v10 = vpack.c.bf16 %v587_v7, %v587_v7  ;;  %2524 = vmatprep.subr.bf16.mxu0 %v2794_v12  ;;  %v991_v38 = vld [vmem:[#allocation2 + $0x32] sm:$0xff]  ;;  %v668_v40 = vld [vmem:[#allocation2 + $0x41] sm:$0xff] }
 0x131   : > { %v293_v8 = vpop.permute.xlu1 %292  ;;  %v295_v9 = vpop.permute.xlu0 %294  ;;  %v2415_v39 = vpack.c.bf16 %v991_v38, %v991_v38  ;;  %v2377_v43 = vpack.c.bf16 %v668_v40, %v668_v40  ;;  %v749_v44 = vld [vmem:[#allocation2 + $0x42] sm:$0xff] }
 0x132   : > { %v3076_v13 = vmax.f32 %v3012_v32, %v293_v8  ;;  %v3079_v14 = vmax.f32 %v3015_v35, %v295_v9  ;;  %544 = vrot.lane.b32.xlu1 %v2355_v5, %s2797_s6  ;;  %624 = vrot.lane.b32.xlu0 %v2364_v60, %s2798_s17  ;;  %414 = vst.msk [vmem:[#allocation3 + $0xc] sm:$0xf] %vm410_vm2, %v3068_v6  ;;  %415 = vst.msk [vmem:[#allocation3 + $0x10] sm:$0xf] %vm410_vm2, %v3070_v10  ;;  %v910_v35 = vld [vmem:[#allocation2 + $0x31] sm:$0xff] }
 0x133   : > { %v831_v15 = vld [vmem:[#allocation2 + $0x50] sm:$0xff]  ;;  %v589_v18 = vld [vmem:[#allocation2 + $0x60] sm:$0xff]  ;;  %v2385_v32 = vpack.c.bf16 %v747_v28, %v747_v28  ;;  %v2405_v37 = vpack.c.bf16 %v910_v35, %v910_v35  ;;  %v2387_v47 = vpack.c.bf16 %v749_v44, %v749_v44 }
 0x134   : > { %357 = vst.msk [vmem:[#allocation2 + $0x91] sm:$0xff] %vm347_vm1, %v3076_v13  ;;  %358 = vst.msk [vmem:[#allocation2 + $0xa1] sm:$0xff] %vm347_vm1, %v3079_v14  ;;  %v3092_v17 = vpack.c.bf16 %v831_v15, %v831_v15  ;;  %v3094_v21 = vpack.c.bf16 %v589_v18, %v589_v18  ;;  %v912_v48 = vld [vmem:[#allocation2 + $0x51] sm:$0xff]  ;;  %v670_v52 = vld [vmem:[#allocation2 + $0x61] sm:$0xff] }
 0x135   : > { %v297_v19 = vpop.permute.xlu1 %296  ;;  %v2407_v49 = vpack.c.bf16 %v912_v48, %v912_v48  ;;  %v993_v50 = vld [vmem:[#allocation2 + $0x52] sm:$0xff]  ;;  %v2379_v53 = vpack.c.bf16 %v670_v52, %v670_v52  ;;  %v751_v56 = vld [vmem:[#allocation2 + $0x62] sm:$0xff] }
 0x136   : > { %v321_v22 = vmax.f32 %v3022_v36, %v297_v19  ;;  %705 = vrot.lane.b32.xlu0 %v2345_v58, %s2799_s19  ;;  %626 = vrot.lane.b32.xlu1 %v3053_v1, %s2798_s17  ;;  %416 = vst.msk [vmem:[#allocation3 + $0x14] sm:$0xf] %vm410_vm2, %v3092_v17  ;;  %417 = vst.msk [vmem:[#allocation3 + $0x18] sm:$0xf] %vm410_vm2, %v3094_v21  ;;  %v2633_v36 = vld [vmem:[%s3572_s1] sm:$0xff]   ;;  %v2417_v51 = vpack.c.bf16 %v993_v50, %v993_v50 }
 0x137   : > { %v833_v24 = vld [vmem:[#allocation2 + $0x70] sm:$0xff]  ;;  %v591_v27 = vld [vmem:[#allocation2 + $0x80] sm:$0xff]  ;;  %2525 = vmatpush3.bf16.msra.mxu0 %v2633_v36  ;;  %v2389_v57 = vpack.c.bf16 %v751_v56, %v751_v56 }
 0x138   : > { %359 = vst.msk [vmem:[#allocation2 + $0xb1] sm:$0xff] %vm347_vm1, %v321_v22  ;;  %v3109_v26 = vpack.c.bf16 %v833_v24, %v833_v24  ;;  %v3111_v29 = vpack.c.bf16 %v591_v27, %v591_v27  ;;  %v914_v58 = vld [vmem:[#allocation2 + $0x71] sm:$0xff]  ;;  %v672_v62 = vld [vmem:[#allocation2 + $0x81] sm:$0xff] }
 0x139   : > { %v2409_v59 = vpack.c.bf16 %v914_v58, %v914_v58  ;;  %v995_v60 = vld [vmem:[#allocation2 + $0x72] sm:$0xff]  ;;  %v2381_v63 = vpack.c.bf16 %v672_v62, %v672_v62  ;;  %v753_v0 = vld [vmem:[#allocation2 + $0x82] sm:$0xff] }
 0x13a   : > { %786 = vrot.lane.b32.xlu0 %v2355_v5, %s2800_s26  ;;  %707 = vrot.lane.b32.xlu1 %v2375_v25, %s2799_s19  ;;  %418 = vst.msk [vmem:[#allocation3 + $0x1c] sm:$0xf] %vm410_vm2, %v3109_v26  ;;  %419 = vst.msk [vmem:[#allocation3 + $0x20] sm:$0xf] %vm410_vm2, %v3111_v29  ;;  %v2419_v61 = vpack.c.bf16 %v995_v60, %v995_v60  ;;  %v2391_v4 = vpack.c.bf16 %v753_v0, %v753_v0 }
 0x13b   : > { %v835_v31 = vld [vmem:[#allocation2 + $0x90] sm:$0xff]  ;;  %v593_v22 = vld [vmem:[#allocation2 + $0xa0] sm:$0xff] }
 0x13c   : > { %v3123_v33 = vpack.c.bf16 %v835_v31, %v835_v31  ;;  %v916_v7 = vld [vmem:[#allocation2 + $0x91] sm:$0xff]  ;;  %v755_v30 = vld [vmem:[#allocation2 + $0xa2] sm:$0xff] }
 0x13d   : > { %v997_v11 = vld [vmem:[#allocation2 + $0x92] sm:$0xff] }
 0x13e   : > { %868 = vrot.lane.b32.xlu0 %v3053_v1, %s2801_s29  ;;  %788 = vrot.lane.b32.xlu1 %v2385_v32, %s2800_s26  ;;  %420 = vst.msk [vmem:[#allocation3 + $0x24] sm:$0xf] %vm410_vm2, %v3123_v33 }
 0x13f   : > { %v837_v34 = vld [vmem:[#allocation2 + $0xb0] sm:$0xff] }
 0x140   : > { %v918_v38 = vld [vmem:[#allocation2 + $0xb1] sm:$0xff] }
 0x142   : > { %949 = vrot.lane.b32.xlu0 %v2375_v25, %s2802_s30  ;;  %870 = vrot.lane.b32.xlu1 %v3068_v6, %s2801_s29 }
 0x146   : > { %1030 = vrot.lane.b32.xlu0 %v2385_v32, %s2803_s11  ;;  %951 = vrot.lane.b32.xlu1 %v2405_v37, %s2802_s30 }
 0x14a   : > { %1032 = vrot.lane.b32.xlu1 %v2415_v39, %s2803_s11  ;;  %465 = vrot.lane.b32.xlu0 %v2375_v25, %s2796_s4  ;;  %v2373_v25 = vpack.c.bf16 %v593_v22, %v593_v22 }
 0x14e   : > { %467 = vrot.lane.b32.xlu1 %v2405_v37, %s2796_s4  ;;  %546 = vrot.lane.b32.xlu0 %v2385_v32, %s2797_s6 }
 0x152   : > { %548 = vrot.lane.b32.xlu1 %v2415_v39, %s2797_s6  ;;  %628 = vrot.lane.b32.xlu0 %v3068_v6, %s2798_s17 }
 0x156   : > { %709 = vrot.lane.b32.xlu0 %v2405_v37, %s2799_s19  ;;  %630 = vrot.lane.b32.xlu1 %v3070_v10, %s2798_s17  ;;  %v2403_v37 = vpack.c.bf16 %v837_v34, %v837_v34 }
 0x15a   : > { %790 = vrot.lane.b32.xlu0 %v2415_v39, %s2800_s26  ;;  %711 = vrot.lane.b32.xlu1 %v2377_v43, %s2799_s19 }
 0x15e   : > { %872 = vrot.lane.b32.xlu0 %v3070_v10, %s2801_s29  ;;  %792 = vrot.lane.b32.xlu1 %v2387_v47, %s2800_s26  ;;  %v2411_v10 = vpack.c.bf16 %v916_v7, %v916_v7 }
 0x162   : > { %953 = vrot.lane.b32.xlu0 %v2377_v43, %s2802_s30  ;;  %874 = vrot.lane.b32.xlu1 %v3092_v17, %s2801_s29 }
 0x166   : > { %1034 = vrot.lane.b32.xlu0 %v2387_v47, %s2803_s11  ;;  %955 = vrot.lane.b32.xlu1 %v2407_v49, %s2802_s30 }
 0x16a   : > { %1036 = vrot.lane.b32.xlu1 %v2417_v51, %s2803_s11  ;;  %469 = vrot.lane.b32.xlu0 %v2377_v43, %s2796_s4  ;;  %v2413_v43 = vpack.c.bf16 %v918_v38, %v918_v38 }
 0x16e   : > { %471 = vrot.lane.b32.xlu1 %v2407_v49, %s2796_s4  ;;  %550 = vrot.lane.b32.xlu0 %v2387_v47, %s2797_s6  ;;  %v999_v47 = vld [vmem:[#allocation2 + $0xb2] sm:$0xff] }
 0x16f   : > { %v2423_v50 = vpack.c.bf16 %v999_v47, %v999_v47 }
 0x172   : > { %552 = vrot.lane.b32.xlu1 %v2417_v51, %s2797_s6  ;;  %632 = vrot.lane.b32.xlu0 %v3092_v17, %s2798_s17  ;;  %v2421_v17 = vpack.c.bf16 %v997_v11, %v997_v11 }
 0x176   : > { %713 = vrot.lane.b32.xlu0 %v2407_v49, %s2799_s19  ;;  %634 = vrot.lane.b32.xlu1 %v3094_v21, %s2798_s17 }
 0x17a   : > { %794 = vrot.lane.b32.xlu0 %v2417_v51, %s2800_s26  ;;  %715 = vrot.lane.b32.xlu1 %v2379_v53, %s2799_s19 }
 0x17e   : > { %876 = vrot.lane.b32.xlu0 %v3094_v21, %s2801_s29  ;;  %796 = vrot.lane.b32.xlu1 %v2389_v57, %s2800_s26 }
 0x182   : > { %957 = vrot.lane.b32.xlu0 %v2379_v53, %s2802_s30  ;;  %878 = vrot.lane.b32.xlu1 %v3109_v26, %s2801_s29 }
 0x186   : > { %1038 = vrot.lane.b32.xlu0 %v2389_v57, %s2803_s11  ;;  %959 = vrot.lane.b32.xlu1 %v2409_v59, %s2802_s30 }
 0x18a   : > { %1040 = vrot.lane.b32.xlu1 %v2419_v61, %s2803_s11  ;;  %473 = vrot.lane.b32.xlu0 %v2379_v53, %s2796_s4 }
 0x18e   : > { %475 = vrot.lane.b32.xlu1 %v2409_v59, %s2796_s4  ;;  %554 = vrot.lane.b32.xlu0 %v2389_v57, %s2797_s6 }
 0x192   : > { %556 = vrot.lane.b32.xlu1 %v2419_v61, %s2797_s6  ;;  %636 = vrot.lane.b32.xlu0 %v3109_v26, %s2798_s17  ;;  %v674_v26 = vld [vmem:[#allocation2 + $0xa1] sm:$0xff] }
 0x196   : > { %717 = vrot.lane.b32.xlu0 %v2409_v59, %s2799_s19  ;;  %638 = vrot.lane.b32.xlu1 %v3111_v29, %s2798_s17 }
 0x19a   : > { %798 = vrot.lane.b32.xlu0 %v2419_v61, %s2800_s26  ;;  %719 = vrot.lane.b32.xlu1 %v2381_v63, %s2799_s19 }
 0x19c   : > { %v462_v1 = vpop.permute.xlu0 %461 }
 0x19d   : > { %492 = vst.msk [vmem:[#allocation3] sm:$0xf] %vm491_vm5, %v462_v1 }
 0x19e   : > { %880 = vrot.lane.b32.xlu0 %v3111_v29, %s2801_s29  ;;  %800 = vrot.lane.b32.xlu1 %v2391_v4, %s2800_s26  ;;  %v2383_v29 = vpack.c.bf16 %v674_v26, %v674_v26 }
 0x1a0   : > { %v464_v5 = vpop.permute.xlu1 %463  ;;  %v543_v6 = vpop.permute.xlu0 %542 }
 0x1a1   : > { %493 = vst.msk [vmem:[#allocation3 + $0x4] sm:$0xf] %vm491_vm5, %v464_v5 }
 0x1a2   : > { %573 = vst.msk [vmem:[#allocation3] sm:$0xf] %vm572_vm6, %v543_v6  ;;  %961 = vrot.lane.b32.xlu0 %v2381_v63, %s2802_s30  ;;  %882 = vrot.lane.b32.xlu1 %v3123_v33, %s2801_s29 }
 0x1a4   : > { %v545_v8 = vpop.permute.xlu1 %544  ;;  %v625_v9 = vpop.permute.xlu0 %624 }
 0x1a5   : > { %574 = vst.msk [vmem:[#allocation3 + $0x4] sm:$0xf] %vm572_vm6, %v545_v8 }
 0x1a6   : > { %655 = vst.msk [vmem:[#allocation3] sm:$0xf] %vm654_vm7, %v625_v9  ;;  %1042 = vrot.lane.b32.xlu0 %v2391_v4, %s2803_s11  ;;  %963 = vrot.lane.b32.xlu1 %v2411_v10, %s2802_s30 }
 0x1a8   : > { %v627_v15 = vpop.permute.xlu1 %626  ;;  %v706_v16 = vpop.permute.xlu0 %705 }
 0x1a9   : > { %656 = vst.msk [vmem:[#allocation3 + $0x4] sm:$0xf] %vm654_vm7, %v627_v15 }
 0x1aa   : > { %736 = vst.msk [vmem:[#allocation3] sm:$0xf] %vm735_vm8, %v706_v16  ;;  %1044 = vrot.lane.b32.xlu1 %v2421_v17, %s2803_s11  ;;  %477 = vrot.lane.b32.xlu0 %v2381_v63, %s2796_s4 }
 0x1ac   : > { %v708_v18 = vpop.permute.xlu1 %707  ;;  %v787_v19 = vpop.permute.xlu0 %786 }
 0x1ad   : > { %737 = vst.msk [vmem:[#allocation3 + $0x4] sm:$0xf] %vm735_vm8, %v708_v18 }
 0x1ae   : > { %817 = vst.msk [vmem:[#allocation3] sm:$0xf] %vm816_vm9, %v787_v19  ;;  %479 = vrot.lane.b32.xlu1 %v2411_v10, %s2796_s4  ;;  %558 = vrot.lane.b32.xlu0 %v2391_v4, %s2797_s6 }
 0x1b0   : > { %v789_v20 = vpop.permute.xlu1 %788  ;;  %v869_v21 = vpop.permute.xlu0 %868 }
 0x1b1   : > { %818 = vst.msk [vmem:[#allocation3 + $0x4] sm:$0xf] %vm816_vm9, %v789_v20 }
 0x1b2   : > { %899 = vst.msk [vmem:[#allocation3] sm:$0xf] %vm898_vm10, %v869_v21  ;;  %560 = vrot.lane.b32.xlu1 %v2421_v17, %s2797_s6  ;;  %640 = vrot.lane.b32.xlu0 %v3123_v33, %s2798_s17  ;;  %v2393_v33 = vpack.c.bf16 %v755_v30, %v755_v30 }
 0x1b4   : > { %v871_v23 = vpop.permute.xlu1 %870  ;;  %v950_v24 = vpop.permute.xlu0 %949 }
 0x1b5   : > { %900 = vst.msk [vmem:[#allocation3 + $0x4] sm:$0xf] %vm898_vm10, %v871_v23 }
 0x1b6   : > { %980 = vst.msk [vmem:[#allocation3] sm:$0xf] %vm979_vm11, %v950_v24  ;;  %721 = vrot.lane.b32.xlu0 %v2411_v10, %s2799_s19  ;;  %642 = vrot.lane.b32.xlu1 %v2373_v25, %s2798_s17 }
 0x1b8   : > { %v952_v27 = vpop.permute.xlu1 %951  ;;  %v1031_v28 = vpop.permute.xlu0 %1030 }
 0x1b9   : > { %981 = vst.msk [vmem:[#allocation3 + $0x4] sm:$0xf] %vm979_vm11, %v952_v27 }
 0x1ba   : > { %1061 = vst.msk [vmem:[#allocation3] sm:$0xf] %vm1060_vm12, %v1031_v28  ;;  %802 = vrot.lane.b32.xlu0 %v2421_v17, %s2800_s26  ;;  %723 = vrot.lane.b32.xlu1 %v2383_v29, %s2799_s19 }
 0x1bc   : > { %v1033_v31 = vpop.permute.xlu1 %1032  ;;  %v466_v32 = vpop.permute.xlu0 %465 }
 0x1bd   : > { %1062 = vst.msk [vmem:[#allocation3 + $0x4] sm:$0xf] %vm1060_vm12, %v1033_v31 }
 0x1be   : > { %494 = vst.msk [vmem:[#allocation3 + $0x8] sm:$0xf] %vm491_vm5, %v466_v32  ;;  %884 = vrot.lane.b32.xlu0 %v2373_v25, %s2801_s29  ;;  %804 = vrot.lane.b32.xlu1 %v2393_v33, %s2800_s26 }
 0x1c0   : > { %v468_v35 = vpop.permute.xlu1 %467  ;;  %v547_v36 = vpop.permute.xlu0 %546 }
 0x1c1   : > { %495 = vst.msk [vmem:[#allocation3 + $0xc] sm:$0xf] %vm491_vm5, %v468_v35 }
 0x1c2   : > { %575 = vst.msk [vmem:[#allocation3 + $0x8] sm:$0xf] %vm572_vm6, %v547_v36  ;;  %965 = vrot.lane.b32.xlu0 %v2383_v29, %s2802_s30  ;;  %886 = vrot.lane.b32.xlu1 %v2403_v37, %s2801_s29 }
 0x1c4   : > { %v549_v39 = vpop.permute.xlu1 %548  ;;  %v629_v40 = vpop.permute.xlu0 %628  ;;  %v2634_v44 = vld [vmem:[#allocation3] sm:$0xff]  }
 0x1c5   : > { %576 = vst.msk [vmem:[#allocation3 + $0xc] sm:$0xf] %vm572_vm6, %v549_v39  ;;  %2527 = vmatmul.mubr.msk.bf16.vlgmr.msra.gmra.mxu0 %vm1142_vm13, %v2634_v44 }
 0x1c6   : > { %657 = vst.msk [vmem:[#allocation3 + $0x8] sm:$0xf] %vm654_vm7, %v629_v40  ;;  %1046 = vrot.lane.b32.xlu0 %v2393_v33, %s2803_s11  ;;  %967 = vrot.lane.b32.xlu1 %v2413_v43, %s2802_s30 }
 0x1c7   : > { %2530 = vmatprep.mubr.msk.bf16.mxu0 %vm2804_vm4, %v2794_v12 }
 0x1c8   : > { %v631_v48 = vpop.permute.xlu1 %630  ;;  %v710_v49 = vpop.permute.xlu0 %709 }
 0x1c9   : > { %658 = vst.msk [vmem:[#allocation3 + $0xc] sm:$0xf] %vm654_vm7, %v631_v48 }
 0x1ca   : > { %738 = vst.msk [vmem:[#allocation3 + $0x8] sm:$0xf] %vm735_vm8, %v710_v49  ;;  %1048 = vrot.lane.b32.xlu1 %v2423_v50, %s2803_s11 }
 0x1cc   : > { %v712_v51 = vpop.permute.xlu1 %711  ;;  %v791_v52 = vpop.permute.xlu0 %790 }
 0x1cd   : > { %739 = vst.msk [vmem:[#allocation3 + $0xc] sm:$0xf] %vm735_vm8, %v712_v51 }
 0x1ce   : > { %819 = vst.msk [vmem:[#allocation3 + $0x8] sm:$0xf] %vm816_vm9, %v791_v52 }
 0x1d0   : > { %v793_v53 = vpop.permute.xlu1 %792  ;;  %v873_v56 = vpop.permute.xlu0 %872 }
 0x1d1   : > { %820 = vst.msk [vmem:[#allocation3 + $0xc] sm:$0xf] %vm816_vm9, %v793_v53 }
 0x1d2   : > { %901 = vst.msk [vmem:[#allocation3 + $0x8] sm:$0xf] %vm898_vm10, %v873_v56 }
 0x1d4   : > { %v875_v57 = vpop.permute.xlu1 %874  ;;  %v954_v58 = vpop.permute.xlu0 %953 }
 0x1d5   : > { %902 = vst.msk [vmem:[#allocation3 + $0xc] sm:$0xf] %vm898_vm10, %v875_v57 }
 0x1d6   : > { %982 = vst.msk [vmem:[#allocation3 + $0x8] sm:$0xf] %vm979_vm11, %v954_v58 }
 0x1d8   : > { %v956_v59 = vpop.permute.xlu1 %955  ;;  %v1035_v60 = vpop.permute.xlu0 %1034 }
 0x1d9   : > { %983 = vst.msk [vmem:[#allocation3 + $0xc] sm:$0xf] %vm979_vm11, %v956_v59 }
 0x1da   : > { %1063 = vst.msk [vmem:[#allocation3 + $0x8] sm:$0xf] %vm1060_vm12, %v1035_v60 }
 0x1dc   : > { %v1037_v61 = vpop.permute.xlu1 %1036  ;;  %v470_v62 = vpop.permute.xlu0 %469 }
 0x1dd   : > { %1064 = vst.msk [vmem:[#allocation3 + $0xc] sm:$0xf] %vm1060_vm12, %v1037_v61 }
 0x1de   : > { %496 = vst.msk [vmem:[#allocation3 + $0x10] sm:$0xf] %vm491_vm5, %v470_v62 }
 0x1e0   : > { %v472_v63 = vpop.permute.xlu1 %471  ;;  %v551_v0 = vpop.permute.xlu0 %550 }
 0x1e1   : > { %497 = vst.msk [vmem:[#allocation3 + $0x14] sm:$0xf] %vm491_vm5, %v472_v63 }
 0x1e2   : > { %577 = vst.msk [vmem:[#allocation3 + $0x10] sm:$0xf] %vm572_vm6, %v551_v0 }
 0x1e4   : > { %v553_v1 = vpop.permute.xlu1 %552  ;;  %v633_v4 = vpop.permute.xlu0 %632  ;;  %v2635_v5 = vld [vmem:[#allocation3 + $0x8] sm:$0xff]  }
 0x1e5   : > { %578 = vst.msk [vmem:[#allocation3 + $0x14] sm:$0xf] %vm572_vm6, %v553_v1  ;;  %2531 = vmatmul.mubr.msk.bf16.gmra.mxu0 %vm1142_vm13, %v2635_v5 }
 0x1e6   : > { %659 = vst.msk [vmem:[#allocation3 + $0x10] sm:$0xf] %vm654_vm7, %v633_v4  ;;  %2534 = vmatprep.mubr.msk.bf16.mxu0 %vm2804_vm4, %v2794_v12 }
 0x1e8   : > { %v635_v6 = vpop.permute.xlu1 %634  ;;  %v714_v7 = vpop.permute.xlu0 %713 }
 0x1e9   : > { %660 = vst.msk [vmem:[#allocation3 + $0x14] sm:$0xf] %vm654_vm7, %v635_v6 }
 0x1ea   : > { %740 = vst.msk [vmem:[#allocation3 + $0x10] sm:$0xf] %vm735_vm8, %v714_v7 }
 0x1ec   : > { %v716_v8 = vpop.permute.xlu1 %715  ;;  %v795_v9 = vpop.permute.xlu0 %794 }
 0x1ed   : > { %741 = vst.msk [vmem:[#allocation3 + $0x14] sm:$0xf] %vm735_vm8, %v716_v8 }
 0x1ee   : > { %821 = vst.msk [vmem:[#allocation3 + $0x10] sm:$0xf] %vm816_vm9, %v795_v9 }
 0x1f0   : > { %v797_v10 = vpop.permute.xlu1 %796  ;;  %v877_v11 = vpop.permute.xlu0 %876 }
 0x1f1   : > { %822 = vst.msk [vmem:[#allocation3 + $0x14] sm:$0xf] %vm816_vm9, %v797_v10 }
 0x1f2   : > { %903 = vst.msk [vmem:[#allocation3 + $0x10] sm:$0xf] %vm898_vm10, %v877_v11 }
 0x1f4   : > { %v879_v15 = vpop.permute.xlu1 %878  ;;  %v958_v16 = vpop.permute.xlu0 %957 }
 0x1f5   : > { %904 = vst.msk [vmem:[#allocation3 + $0x14] sm:$0xf] %vm898_vm10, %v879_v15 }
 0x1f6   : > { %984 = vst.msk [vmem:[#allocation3 + $0x10] sm:$0xf] %vm979_vm11, %v958_v16 }
 0x1f8   : > { %v960_v17 = vpop.permute.xlu1 %959  ;;  %v1039_v18 = vpop.permute.xlu0 %1038 }
 0x1f9   : > { %985 = vst.msk [vmem:[#allocation3 + $0x14] sm:$0xf] %vm979_vm11, %v960_v17 }
 0x1fa   : > { %1065 = vst.msk [vmem:[#allocation3 + $0x10] sm:$0xf] %vm1060_vm12, %v1039_v18 }
 0x1fc   : > { %v1041_v19 = vpop.permute.xlu1 %1040  ;;  %v474_v20 = vpop.permute.xlu0 %473 }
 0x1fd   : > { %1066 = vst.msk [vmem:[#allocation3 + $0x14] sm:$0xf] %vm1060_vm12, %v1041_v19 }
 0x1fe   : > { %498 = vst.msk [vmem:[#allocation3 + $0x18] sm:$0xf] %vm491_vm5, %v474_v20 }
 0x200   : > { %v476_v21 = vpop.permute.xlu1 %475  ;;  %v555_v22 = vpop.permute.xlu0 %554 }
 0x201   : > { %499 = vst.msk [vmem:[#allocation3 + $0x1c] sm:$0xf] %vm491_vm5, %v476_v21 }
 0x202   : > { %579 = vst.msk [vmem:[#allocation3 + $0x18] sm:$0xf] %vm572_vm6, %v555_v22 }
 0x204   : > { %v557_v23 = vpop.permute.xlu1 %556  ;;  %v637_v24 = vpop.permute.xlu0 %636  ;;  %v2636_v25 = vld [vmem:[#allocation3 + $0x10] sm:$0xff]  }
 0x205   : > { %580 = vst.msk [vmem:[#allocation3 + $0x1c] sm:$0xf] %vm572_vm6, %v557_v23  ;;  %2535 = vmatmul.mubr.msk.bf16.gmra.mxu0 %vm1142_vm13, %v2636_v25 }
 0x206   : > { %661 = vst.msk [vmem:[#allocation3 + $0x18] sm:$0xf] %vm654_vm7, %v637_v24  ;;  %2538 = vmatprep.mubr.msk.bf16.mxu0 %vm2804_vm4, %v2794_v12 }
 0x208   : > { %v639_v26 = vpop.permute.xlu1 %638  ;;  %v718_v27 = vpop.permute.xlu0 %717 }
 0x209   : > { %662 = vst.msk [vmem:[#allocation3 + $0x1c] sm:$0xf] %vm654_vm7, %v639_v26 }
 0x20a   : > { %742 = vst.msk [vmem:[#allocation3 + $0x18] sm:$0xf] %vm735_vm8, %v718_v27 }
 0x20c   : > { %v720_v28 = vpop.permute.xlu1 %719  ;;  %v799_v29 = vpop.permute.xlu0 %798 }
 0x20d   : > { %743 = vst.msk [vmem:[#allocation3 + $0x1c] sm:$0xf] %vm735_vm8, %v720_v28 }
 0x20e   : > { %823 = vst.msk [vmem:[#allocation3 + $0x18] sm:$0xf] %vm816_vm9, %v799_v29 }
 0x210   : > { %v801_v30 = vpop.permute.xlu1 %800  ;;  %v881_v31 = vpop.permute.xlu0 %880 }
 0x211   : > { %824 = vst.msk [vmem:[#allocation3 + $0x1c] sm:$0xf] %vm816_vm9, %v801_v30 }
 0x212   : > { %905 = vst.msk [vmem:[#allocation3 + $0x18] sm:$0xf] %vm898_vm10, %v881_v31 }
 0x214   : > { %v883_v32 = vpop.permute.xlu1 %882  ;;  %v962_v33 = vpop.permute.xlu0 %961 }
 0x215   : > { %906 = vst.msk [vmem:[#allocation3 + $0x1c] sm:$0xf] %vm898_vm10, %v883_v32 }
 0x216   : > { %986 = vst.msk [vmem:[#allocation3 + $0x18] sm:$0xf] %vm979_vm11, %v962_v33 }
 0x218   : > { %v964_v34 = vpop.permute.xlu1 %963  ;;  %v1043_v35 = vpop.permute.xlu0 %1042 }
 0x219   : > { %987 = vst.msk [vmem:[#allocation3 + $0x1c] sm:$0xf] %vm979_vm11, %v964_v34 }
 0x21a   : > { %1067 = vst.msk [vmem:[#allocation3 + $0x18] sm:$0xf] %vm1060_vm12, %v1043_v35 }
 0x21c   : > { %v1045_v36 = vpop.permute.xlu1 %1044  ;;  %v478_v37 = vpop.permute.xlu0 %477 }
 0x21d   : > { %1068 = vst.msk [vmem:[#allocation3 + $0x1c] sm:$0xf] %vm1060_vm12, %v1045_v36 }
 0x21e   : > { %500 = vst.msk [vmem:[#allocation3 + $0x20] sm:$0xf] %vm491_vm5, %v478_v37 }
 0x220   : > { %v480_v38 = vpop.permute.xlu1 %479  ;;  %v559_v39 = vpop.permute.xlu0 %558 }
 0x221   : > { %501 = vst.msk [vmem:[#allocation3 + $0x24] sm:$0xf] %vm491_vm5, %v480_v38 }
 0x222   : > { %581 = vst.msk [vmem:[#allocation3 + $0x20] sm:$0xf] %vm572_vm6, %v559_v39 }
 0x224   : > { %v561_v40 = vpop.permute.xlu1 %560  ;;  %v641_v43 = vpop.permute.xlu0 %640  ;;  %v2637_v44 = vld [vmem:[#allocation3 + $0x18] sm:$0xff]  }
 0x225   : > { %582 = vst.msk [vmem:[#allocation3 + $0x24] sm:$0xf] %vm572_vm6, %v561_v40  ;;  %2539 = vmatmul.mubr.msk.bf16.gmra.mxu0 %vm1142_vm13, %v2637_v44 }
 0x226   : > { %663 = vst.msk [vmem:[#allocation3 + $0x20] sm:$0xf] %vm654_vm7, %v641_v43  ;;  %2542 = vmatprep.mubr.msk.bf16.mxu0 %vm2804_vm4, %v2794_v12 }
 0x228   : > { %v643_v47 = vpop.permute.xlu1 %642  ;;  %v722_v48 = vpop.permute.xlu0 %721 }
 0x229   : > { %664 = vst.msk [vmem:[#allocation3 + $0x24] sm:$0xf] %vm654_vm7, %v643_v47 }
 0x22a   : > { %744 = vst.msk [vmem:[#allocation3 + $0x20] sm:$0xf] %vm735_vm8, %v722_v48 }
 0x22c   : > { %v724_v49 = vpop.permute.xlu1 %723  ;;  %v803_v50 = vpop.permute.xlu0 %802 }
 0x22d   : > { %745 = vst.msk [vmem:[#allocation3 + $0x24] sm:$0xf] %vm735_vm8, %v724_v49 }
 0x22e   : > { %825 = vst.msk [vmem:[#allocation3 + $0x20] sm:$0xf] %vm816_vm9, %v803_v50 }
 0x230   : > { %v805_v51 = vpop.permute.xlu1 %804  ;;  %v885_v52 = vpop.permute.xlu0 %884 }
 0x231   : > { %826 = vst.msk [vmem:[#allocation3 + $0x24] sm:$0xf] %vm816_vm9, %v805_v51 }
 0x232   : > { %907 = vst.msk [vmem:[#allocation3 + $0x20] sm:$0xf] %vm898_vm10, %v885_v52 }
 0x234   : > { %v887_v53 = vpop.permute.xlu1 %886  ;;  %v966_v12 = vpop.permute.xlu0 %965 }
 0x235   : > { %908 = vst.msk [vmem:[#allocation3 + $0x24] sm:$0xf] %vm898_vm10, %v887_v53 }
 0x236   : > { %988 = vst.msk [vmem:[#allocation3 + $0x20] sm:$0xf] %vm979_vm11, %v966_v12 }
 0x238   : > { %v968_v56 = vpop.permute.xlu1 %967  ;;  %v1047_v57 = vpop.permute.xlu0 %1046 }
 0x239   : > { %989 = vst.msk [vmem:[#allocation3 + $0x24] sm:$0xf] %vm979_vm11, %v968_v56 }
 0x23a   : > { %1069 = vst.msk [vmem:[#allocation3 + $0x20] sm:$0xf] %vm1060_vm12, %v1047_v57 }
 0x23c   : > { %v1049_v58 = vpop.permute.xlu1 %1048 }
 0x23d   : > { %1070 = vst.msk [vmem:[#allocation3 + $0x24] sm:$0xf] %vm1060_vm12, %v1049_v58 }
 0x244   : > { %v2638_v59 = vld [vmem:[#allocation3 + $0x20] sm:$0xff]  }
 0x245   : > { %2543 = vmatmul.mubr.msk.bf16.gmra.mxu0 %vm1142_vm13, %v2638_v59 }
 0x285   : > { %v1196_v60 = vpop.f32.mrf.mxu0 }
 0x286   : > { %v2234_v61 = vmul.f32 -1.442695, %v1196_v60 }
 0x287   : > { %v2528_v62 = vpop.f32.mrf.mxu0 }
 0x288   : > { %2648 = vpow2.f32 %v2234_v61 }
 0x289   : > { %v1199_v63 = vpop.f32.mrf.mxu0 }
 0x28a   : > { %v2235_v0 = vmul.f32 -1.442695, %v1199_v63 }
 0x28b   : > { %v2529_v1 = vpop.f32.mrf.mxu0 }
 0x28c   : > { %2650 = vpow2.f32 %v2235_v0 }
 0x295   : > { %v2649_v4 = vpop.eup %2648 }
 0x296   : > { %v1265_v5 = vadd.f32 1.0, %v2649_v4 }
 0x298   : > { %2652 = vrcp.f32 %v1265_v5 }
 0x299   : > { %v2651_v6 = vpop.eup %2650 }
 0x29a   : > { %v1266_v7 = vadd.f32 1.0, %v2651_v6 }
 0x29c   : > { %2654 = vrcp.f32 %v1266_v7 }
 0x2a5   : > { %v1204_v8 = vpop.f32.mrf.mxu0  ;;  %v2653_v9 = vpop.eup %2652 }
 0x2a6   : > { %v2236_v10 = vmul.f32 -1.442695, %v1204_v8  ;;  %v1295_v11 = vmul.f32 %v2653_v9, %v3027_v41 }
 0x2a7   : > { %v2532_v15 = vpop.f32.mrf.mxu0 }
 0x2a8   : > { %2656 = vpow2.f32 %v2236_v10  ;;  %1305 = vst.msk [vmem:[#allocation2 + $0x1] sm:$0xff] %vm347_vm1, %v1295_v11 }
 0x2a9   : > { %v1207_v16 = vpop.f32.mrf.mxu0  ;;  %v2655_v17 = vpop.eup %2654 }
 0x2aa   : > { %v2237_v18 = vmul.f32 -1.442695, %v1207_v16  ;;  %v1296_v19 = vmul.f32 %v2655_v17, %v3029_v42 }
 0x2ab   : > { %v2533_v20 = vpop.f32.mrf.mxu0 }
 0x2ac   : > { %2658 = vpow2.f32 %v2237_v18  ;;  %1306 = vst.msk [vmem:[#allocation2 + $0x11] sm:$0xff] %vm347_vm1, %v1296_v19 }
 0x2af   : > { %v1363_v21 = vld [vmem:[#allocation2 + $0x1] sm:$0xff] }
 0x2b0   : > { %v1315_v22 = vld [vmem:[#allocation2] sm:$0xff]  ;;  %v2432_v23 = vpack.c.bf16 %v1363_v21, %v1363_v21 }
 0x2b1   : > { %v2424_v24 = vpack.c.bf16 %v1315_v22, %v1315_v22  ;;  %v1427_v25 = vld [vmem:[#allocation2 + $0x2] sm:$0xff] }
 0x2b2   : > { %1395 = vrot.lane.b32.xlu0 %v2432_v23, %s2796_s4  ;;  %v2440_v28 = vpack.c.bf16 %v1427_v25, %v1427_v25  ;;  %v2641_v23 = vld [vmem:[%s3573_s2 + $0x18] sm:$0xff]  }
 0x2b3   : > { %1355 = vst.msk [vmem:[#allocation3] sm:$0xf] %vm410_vm2, %v2424_v24  ;;  %v1364_v41 = vld [vmem:[#allocation2 + $0x11] sm:$0xff] }
 0x2b4   : > { %v1491_v26 = vld [vmem:[#allocation2 + $0x10] sm:$0xff]  ;;  %v2433_v29 = vpack.c.bf16 %v1364_v41, %v1364_v41 }
 0x2b5   : > { %v2657_v27 = vpop.eup %2656  ;;  %v2448_v30 = vpack.c.bf16 %v1491_v26, %v1491_v26  ;;  %v1428_v31 = vld [vmem:[#allocation2 + $0x12] sm:$0xff] }
 0x2b6   : > { %v1267_v42 = vadd.f32 1.0, %v2657_v27  ;;  %1459 = vrot.lane.b32.xlu0 %v2440_v28, %s2797_s6  ;;  %1397 = vrot.lane.b32.xlu1 %v2433_v29, %s2796_s4  ;;  %v2441_v33 = vpack.c.bf16 %v1428_v31, %v1428_v31  ;;  %v2642_v26 = vld [vmem:[%s3573_s2 + $0x10] sm:$0xff]  }
 0x2b7   : > { %1356 = vst.msk [vmem:[#allocation3 + $0x4] sm:$0xf] %vm410_vm2, %v2448_v30 }
 0x2b8   : > { %2660 = vrcp.f32 %v1267_v42  ;;  %v2644_v42 = vld [vmem:[%s3573_s2] sm:$0xff]  }
 0x2b9   : > { %v2659_v32 = vpop.eup %2658 }
 0x2ba   : > { %v1268_v34 = vadd.f32 1.0, %v2659_v32  ;;  %1523 = vrot.lane.b32.xlu0 %v2448_v30, %s2798_s17  ;;  %1461 = vrot.lane.b32.xlu1 %v2441_v33, %s2797_s6 }
 0x2bc   : > { %2662 = vrcp.f32 %v1268_v34 }
 0x2be   : > { %1587 = vrot.lane.b32.xlu0 %v2433_v29, %s2799_s19  ;;  %v2643_v29 = vld [vmem:[%s3573_s2 + $0x8] sm:$0xff]  }
 0x2c2   : > { %1651 = vrot.lane.b32.xlu0 %v2441_v33, %s2800_s26 }
 0x2c5   : > { %v2661_v35 = vpop.eup %2660  ;;  %v1212_v36 = vpop.f32.mrf.mxu0 }
 0x2c6   : > { %v1297_v37 = vmul.f32 %v2661_v35, %v3035_v45  ;;  %v2238_v38 = vmul.f32 -1.442695, %v1212_v36 }
 0x2c7   : > { %v2536_v39 = vpop.f32.mrf.mxu0 }
 0x2c8   : > { %1307 = vst.msk [vmem:[#allocation2 + $0x21] sm:$0xff] %vm347_vm1, %v1297_v37  ;;  %2664 = vpow2.f32 %v2238_v38 }
 0x2c9   : > { %v2663_v40 = vpop.eup %2662  ;;  %v1215_v43 = vpop.f32.mrf.mxu0 }
 0x2ca   : > { %v1298_v44 = vmul.f32 %v2663_v40, %v3037_v46  ;;  %v2239_v47 = vmul.f32 -1.442695, %v1215_v43 }
 0x2cb   : > { %v2537_v48 = vpop.f32.mrf.mxu0 }
 0x2cc   : > { %1308 = vst.msk [vmem:[#allocation2 + $0x31] sm:$0xff] %vm347_vm1, %v1298_v44  ;;  %2666 = vpow2.f32 %v2239_v47 }
 0x2cf   : > { %v1492_v49 = vld [vmem:[#allocation2 + $0x20] sm:$0xff] }
 0x2d0   : > { %v1365_v50 = vld [vmem:[#allocation2 + $0x21] sm:$0xff]  ;;  %v2449_v51 = vpack.c.bf16 %v1492_v49, %v1492_v49 }
 0x2d1   : > { %v2434_v52 = vpack.c.bf16 %v1365_v50, %v1365_v50  ;;  %v1429_v53 = vld [vmem:[#allocation2 + $0x22] sm:$0xff] }
 0x2d2   : > { %1525 = vrot.lane.b32.xlu1 %v2449_v51, %s2798_s17  ;;  %1357 = vst.msk [vmem:[#allocation3 + $0x8] sm:$0xf] %vm410_vm2, %v2449_v51  ;;  %v2442_v12 = vpack.c.bf16 %v1429_v53, %v1429_v53 }
 0x2d3   : > { %1399 = vrot.lane.b32.xlu0 %v2434_v52, %s2796_s4  ;;  %v1493_v45 = vld [vmem:[#allocation2 + $0x30] sm:$0xff] }
 0x2d4   : > { %v2450_v56 = vpack.c.bf16 %v1493_v45, %v1493_v45  ;;  %v1366_v59 = vld [vmem:[#allocation2 + $0x31] sm:$0xff] }
 0x2d5   : > { %v2665_v46 = vpop.eup %2664  ;;  %v2435_v61 = vpack.c.bf16 %v1366_v59, %v1366_v59  ;;  %v1430_v62 = vld [vmem:[#allocation2 + $0x32] sm:$0xff] }
 0x2d6   : > { %v1269_v57 = vadd.f32 1.0, %v2665_v46  ;;  %1589 = vrot.lane.b32.xlu1 %v2434_v52, %s2799_s19  ;;  %1358 = vst.msk [vmem:[#allocation3 + $0xc] sm:$0xf] %vm410_vm2, %v2450_v56  ;;  %v2443_v63 = vpack.c.bf16 %v1430_v62, %v1430_v62 }
 0x2d7   : > { %1463 = vrot.lane.b32.xlu0 %v2442_v12, %s2797_s6 }
 0x2d8   : > { %2668 = vrcp.f32 %v1269_v57 }
 0x2d9   : > { %v2667_v58 = vpop.eup %2666 }
 0x2da   : > { %v1270_v60 = vadd.f32 1.0, %v2667_v58  ;;  %1653 = vrot.lane.b32.xlu1 %v2442_v12, %s2800_s26 }
 0x2db   : > { %1715 = vrot.lane.b32.xlu0 %v2449_v51, %s2801_s29 }
 0x2dc   : > { %2670 = vrcp.f32 %v1270_v60 }
 0x2de   : > { %1401 = vrot.lane.b32.xlu1 %v2435_v61, %s2796_s4 }
 0x2df   : > { %1779 = vrot.lane.b32.xlu0 %v2434_v52, %s2802_s30 }
 0x2e2   : > { %1465 = vrot.lane.b32.xlu1 %v2443_v63, %s2797_s6 }
 0x2e3   : > { %1843 = vrot.lane.b32.xlu0 %v2442_v12, %s2803_s11 }
 0x2e5   : > { %v2669_v0 = vpop.eup %2668  ;;  %v1220_v1 = vpop.f32.mrf.mxu0 }
 0x2e6   : > { %v1299_v4 = vmul.f32 %v2669_v0, %v3043_v54  ;;  %v2240_v5 = vmul.f32 -1.442695, %v1220_v1  ;;  %1717 = vrot.lane.b32.xlu1 %v2450_v56, %s2801_s29 }
 0x2e7   : > { %1527 = vrot.lane.b32.xlu0 %v2450_v56, %s2798_s17  ;;  %v2540_v6 = vpop.f32.mrf.mxu0 }
 0x2e8   : > { %1309 = vst.msk [vmem:[#allocation2 + $0x41] sm:$0xff] %vm347_vm1, %v1299_v4  ;;  %2672 = vpow2.f32 %v2240_v5 }
 0x2e9   : > { %v2671_v7 = vpop.eup %2670  ;;  %v1223_v8 = vpop.f32.mrf.mxu0 }
 0x2ea   : > { %v1300_v9 = vmul.f32 %v2671_v7, %v3045_v55  ;;  %v2241_v10 = vmul.f32 -1.442695, %v1223_v8  ;;  %1781 = vrot.lane.b32.xlu1 %v2435_v61, %s2802_s30  ;;  %v2640_v55 = vld [vmem:[%s3573_s2 + $0x20] ss:$0 sps:$4 sm:$0xff]  }
 0x2eb   : > { %1591 = vrot.lane.b32.xlu0 %v2435_v61, %s2799_s19  ;;  %v2541_v11 = vpop.f32.mrf.mxu0  ;;  %2564 = vmatprep.subr.msk.bf16.mxu1 %vm1158_vm3, %v2640_v55  ;;  %v1952_v18 = vsel %vm1158_vm3, %v2640_v55, 0 }
 0x2ec   : > { %1310 = vst.msk [vmem:[#allocation2 + $0x51] sm:$0xff] %vm347_vm1, %v1300_v9  ;;  %2674 = vpow2.f32 %v2241_v10  ;;  %2547 = vmatpush3.bf16.msra.mxu1 %v1952_v18 }
 0x2ed   : > { %2548 = vmatprep.subr.bf16.mxu1 %v2641_v23 }
 0x2ee   : > { %1845 = vrot.lane.b32.xlu1 %v2443_v63, %s2803_s11 }
 0x2ef   : > { %1655 = vrot.lane.b32.xlu0 %v2443_v63, %s2800_s26  ;;  %v1685_v54 = vld [vmem:[#allocation2 + $0x40] sm:$0xff] }
 0x2f0   : > { %v2474_v15 = vpack.c.bf16 %v1685_v54, %v1685_v54  ;;  %v1749_v16 = vld [vmem:[#allocation2 + $0x41] sm:$0xff]  ;;  %2549 = vmatpush3.bf16.msra.mxu1 %v2641_v23 }
 0x2f1   : > { %v2482_v19 = vpack.c.bf16 %v1749_v16, %v1749_v16  ;;  %v1622_v22 = vld [vmem:[#allocation2 + $0x42] sm:$0xff]  ;;  %2550 = vmatprep.subr.bf16.mxu1 %v2642_v26 }
 0x2f2   : > { %1529 = vrot.lane.b32.xlu1 %v2474_v15, %s2798_s17  ;;  %1359 = vst.msk [vmem:[#allocation3 + $0x10] sm:$0xf] %vm410_vm2, %v2474_v15  ;;  %v2467_v25 = vpack.c.bf16 %v1622_v22, %v1622_v22 }
 0x2f3   : > { %1719 = vrot.lane.b32.xlu0 %v2474_v15, %s2801_s29  ;;  %v1686_v17 = vld [vmem:[#allocation2 + $0x50] sm:$0xff] }
 0x2f4   : > { %v2475_v20 = vpack.c.bf16 %v1686_v17, %v1686_v17  ;;  %2551 = vmatpush3.bf16.msra.mxu1 %v2642_v26  ;;  %v1750_v28 = vld [vmem:[#allocation2 + $0x51] sm:$0xff] }
 0x2f5   : > { %v2673_v21 = vpop.eup %2672  ;;  %2552 = vmatprep.subr.bf16.mxu1 %v2643_v29  ;;  %v2483_v30 = vpack.c.bf16 %v1750_v28, %v1750_v28  ;;  %v1814_v33 = vld [vmem:[#allocation2 + $0x52] sm:$0xff] }
 0x2f6   : > { %v1271_v24 = vadd.f32 1.0, %v2673_v21  ;;  %1593 = vrot.lane.b32.xlu1 %v2482_v19, %s2799_s19  ;;  %1360 = vst.msk [vmem:[#allocation3 + $0x14] sm:$0xf] %vm410_vm2, %v2475_v20  ;;  %v2491_v37 = vpack.c.bf16 %v1814_v33, %v1814_v33 }
 0x2f7   : > { %1783 = vrot.lane.b32.xlu0 %v2482_v19, %s2802_s30 }
 0x2f8   : > { %2676 = vrcp.f32 %v1271_v24  ;;  %2553 = vmatpush3.bf16.msra.mxu1 %v2643_v29 }
 0x2f9   : > { %v2675_v41 = vpop.eup %2674  ;;  %2554 = vmatprep.subr.bf16.mxu1 %v2644_v42 }
 0x2fa   : > { %v1272_v27 = vadd.f32 1.0, %v2675_v41  ;;  %1657 = vrot.lane.b32.xlu1 %v2467_v25, %s2800_s26 }
 0x2fb   : > { %1403 = vrot.lane.b32.xlu0 %v2482_v19, %s2796_s4 }
 0x2fc   : > { %2678 = vrcp.f32 %v1272_v27  ;;  %2555 = vmatpush3.bf16.msra.mxu1 %v2644_v42 }
 0x2fe   : > { %1721 = vrot.lane.b32.xlu1 %v2475_v20, %s2801_s29 }
 0x2ff   : > { %1847 = vrot.lane.b32.xlu0 %v2467_v25, %s2803_s11 }
 0x302   : > { %1785 = vrot.lane.b32.xlu1 %v2483_v30, %s2802_s30 }
 0x303   : > { %1467 = vrot.lane.b32.xlu0 %v2467_v25, %s2797_s6 }
 0x305   : > { %v2677_v31 = vpop.eup %2676  ;;  %v1228_v32 = vpop.f32.mrf.mxu0 }
 0x306   : > { %v1301_v34 = vmul.f32 %v2677_v31, %v3055_v2  ;;  %v2242_v35 = vmul.f32 -1.442695, %v1228_v32  ;;  %1405 = vrot.lane.b32.xlu1 %v2483_v30, %s2796_s4 }
 0x307   : > { %1531 = vrot.lane.b32.xlu0 %v2475_v20, %s2798_s17  ;;  %v2544_v36 = vpop.f32.mrf.mxu0 }
 0x308   : > { %1311 = vst.msk [vmem:[#allocation2 + $0x61] sm:$0xff] %vm347_vm1, %v1301_v34  ;;  %2680 = vpow2.f32 %v2242_v35 }
 0x309   : > { %v2679_v38 = vpop.eup %2678  ;;  %v1231_v39 = vpop.f32.mrf.mxu0 }
 0x30a   : > { %v1302_v40 = vmul.f32 %v2679_v38, %v3057_v3  ;;  %v2243_v43 = vmul.f32 -1.442695, %v1231_v39  ;;  %1849 = vrot.lane.b32.xlu1 %v2491_v37, %s2803_s11 }
 0x30b   : > { %1595 = vrot.lane.b32.xlu0 %v2483_v30, %s2799_s19  ;;  %v2545_v2 = vpop.f32.mrf.mxu0 }
 0x30c   : > { %1312 = vst.msk [vmem:[#allocation2 + $0x71] sm:$0xff] %vm347_vm1, %v1302_v40  ;;  %2682 = vpow2.f32 %v2243_v43 }
 0x30e   : > { %1469 = vrot.lane.b32.xlu1 %v2491_v37, %s2797_s6 }
 0x30f   : > { %1659 = vrot.lane.b32.xlu0 %v2491_v37, %s2800_s26  ;;  %v1496_v44 = vld [vmem:[#allocation2 + $0x60] sm:$0xff] }
 0x310   : > { %v1369_v47 = vld [vmem:[#allocation2 + $0x61] sm:$0xff]  ;;  %v2453_v48 = vpack.c.bf16 %v1496_v44, %v1496_v44 }
 0x311   : > { %v2438_v49 = vpack.c.bf16 %v1369_v47, %v1369_v47  ;;  %v1433_v50 = vld [vmem:[#allocation2 + $0x62] sm:$0xff] }
 0x312   : > { %1533 = vrot.lane.b32.xlu1 %v2453_v48, %s2798_s17  ;;  %1361 = vst.msk [vmem:[#allocation3 + $0x18] sm:$0xf] %vm410_vm2, %v2453_v48  ;;  %v2446_v51 = vpack.c.bf16 %v1433_v50, %v1433_v50 }
 0x313   : > { %1407 = vrot.lane.b32.xlu0 %v2438_v49, %s2796_s4  ;;  %v1497_v3 = vld [vmem:[#allocation2 + $0x70] sm:$0xff] }
 0x314   : > { %v2454_v52 = vpack.c.bf16 %v1497_v3, %v1497_v3  ;;  %v1370_v56 = vld [vmem:[#allocation2 + $0x71] sm:$0xff] }
 0x315   : > { %v2681_v53 = vpop.eup %2680  ;;  %v2439_v57 = vpack.c.bf16 %v1370_v56, %v1370_v56  ;;  %v1434_v58 = vld [vmem:[#allocation2 + $0x72] sm:$0xff] }
 0x316   : > { %v1273_v45 = vadd.f32 1.0, %v2681_v53  ;;  %1597 = vrot.lane.b32.xlu1 %v2438_v49, %s2799_s19  ;;  %1362 = vst.msk [vmem:[#allocation3 + $0x1c] sm:$0xf] %vm410_vm2, %v2454_v52  ;;  %v2447_v59 = vpack.c.bf16 %v1434_v58, %v1434_v58 }
 0x317   : > { %1471 = vrot.lane.b32.xlu0 %v2446_v51, %s2797_s6 }
 0x318   : > { %2684 = vrcp.f32 %v1273_v45 }
 0x319   : > { %v2683_v12 = vpop.eup %2682 }
 0x31a   : > { %v1274_v46 = vadd.f32 1.0, %v2683_v12  ;;  %1661 = vrot.lane.b32.xlu1 %v2446_v51, %s2800_s26 }
 0x31b   : > { %1723 = vrot.lane.b32.xlu0 %v2453_v48, %s2801_s29 }
 0x31c   : > { %2686 = vrcp.f32 %v1274_v46 }
 0x31e   : > { %1409 = vrot.lane.b32.xlu1 %v2439_v57, %s2796_s4 }
 0x31f   : > { %1787 = vrot.lane.b32.xlu0 %v2438_v49, %s2802_s30 }
 0x322   : > { %1473 = vrot.lane.b32.xlu1 %v2447_v59, %s2797_s6  ;;  %s2128_s6 = sshll.u32 %s2918_s5, 6 }
 0x323   : > { %1851 = vrot.lane.b32.xlu0 %v2446_v51, %s2803_s11 }
 0x324   : > { %v1396_v61 = vpop.permute.xlu0 %1395 }
 0x325   : > { %v2685_v60 = vpop.eup %2684  ;;  %1419 = vst.msk [vmem:[#allocation3] sm:$0xf] %vm491_vm5, %v1396_v61 }
 0x326   : > { %v1303_v62 = vmul.f32 %v2685_v60, %v3076_v13  ;;  %1725 = vrot.lane.b32.xlu1 %v2454_v52, %s2801_s29 }
 0x327   : > { %1535 = vrot.lane.b32.xlu0 %v2454_v52, %s2798_s17 }
 0x328   : > { %1313 = vst.msk [vmem:[#allocation2 + $0x81] sm:$0xff] %vm347_vm1, %v1303_v62  ;;  %v1398_v0 = vpop.permute.xlu1 %1397  ;;  %v1460_v1 = vpop.permute.xlu0 %1459 }
 0x329   : > { %v2687_v63 = vpop.eup %2686  ;;  %1420 = vst.msk [vmem:[#allocation3 + $0x4] sm:$0xf] %vm491_vm5, %v1398_v0 }
 0x32a   : > { %v1304_v4 = vmul.f32 %v2687_v63, %v3079_v14  ;;  %1483 = vst.msk [vmem:[#allocation3] sm:$0xf] %vm572_vm6, %v1460_v1  ;;  %1789 = vrot.lane.b32.xlu1 %v2439_v57, %s2802_s30 }
 0x32b   : > { %1599 = vrot.lane.b32.xlu0 %v2439_v57, %s2799_s19 }
 0x32c   : > { %1314 = vst.msk [vmem:[#allocation2 + $0x91] sm:$0xff] %vm347_vm1, %v1304_v4  ;;  %v1462_v13 = vpop.permute.xlu1 %1461  ;;  %v1524_v5 = vpop.permute.xlu0 %1523 }
 0x32d   : > { %1484 = vst.msk [vmem:[#allocation3 + $0x4] sm:$0xf] %vm572_vm6, %v1462_v13 }
 0x32e   : > { %1547 = vst.msk [vmem:[#allocation3] sm:$0xf] %vm654_vm7, %v1524_v5  ;;  %1853 = vrot.lane.b32.xlu1 %v2447_v59, %s2803_s11 }
 0x32f   : > { %1663 = vrot.lane.b32.xlu0 %v2447_v59, %s2800_s26  ;;  %v1689_v14 = vld [vmem:[#allocation2 + $0x80] sm:$0xff] }
 0x330   : > { %v2478_v6 = vpack.c.bf16 %v1689_v14, %v1689_v14  ;;  %v1588_v7 = vpop.permute.xlu0 %1587  ;;  %v1753_v8 = vld [vmem:[#allocation2 + $0x81] sm:$0xff] }
 0x331   : > { %1611 = vst.msk [vmem:[#allocation3] sm:$0xf] %vm735_vm8, %v1588_v7  ;;  %v2486_v9 = vpack.c.bf16 %v1753_v8, %v1753_v8  ;;  %v1817_v11 = vld [vmem:[#allocation2 + $0x82] sm:$0xff] }
 0x332   : > { %1537 = vrot.lane.b32.xlu1 %v2478_v6, %s2798_s17  ;;  %v2494_v54 = vpack.c.bf16 %v1817_v11, %v1817_v11  ;;  %s3495_s17 = scalar_lea.vmem [#allocation7], %s2128_s6 }
 0x333   : > { %1727 = vrot.lane.b32.xlu0 %v2478_v6, %s2801_s29  ;;  %v1690_v15 = vld [vmem:[#allocation2 + $0x90] sm:$0xff] }
 0x334   : > { %v1652_v10 = vpop.permute.xlu0 %1651  ;;  %v2479_v16 = vpack.c.bf16 %v1690_v15, %v1690_v15  ;;  %v1754_v55 = vld [vmem:[#allocation2 + $0x91] sm:$0xff] }
 0x335   : > { %1675 = vst.msk [vmem:[#allocation3] sm:$0xf] %vm816_vm9, %v1652_v10  ;;  %v2487_v17 = vpack.c.bf16 %v1754_v55, %v1754_v55  ;;  %v1818_v18 = vld [vmem:[#allocation2 + $0x92] sm:$0xff] }
 0x336   : > { %1601 = vrot.lane.b32.xlu1 %v2486_v9, %s2799_s19  ;;  %v2495_v21 = vpack.c.bf16 %v1818_v18, %v1818_v18  ;;  %v2688_v18 = vld [vmem:[%s2922_s10 + $0x20] sm:$0xff]  ;;  %s2496_s19 = sshll.u32 %s2848_s16, 10  ;;  %s2037_s16 = scalar_lea.sflag [#allocation6], %s2918_s5 }
 0x337   : > { %1791 = vrot.lane.b32.xlu0 %v2486_v9, %s2802_s30 }
 0x33a   : > { %1665 = vrot.lane.b32.xlu1 %v2494_v54, %s2800_s26  ;;  %s2050_s26 = sshll.u32 %s3495_s17, 4  ;;  %s3525_s26 = int_to_ptr.vmem [resolvable:$true] %s2050_s26 }
 0x33b   : > { %1855 = vrot.lane.b32.xlu0 %v2494_v54, %s2803_s11  ;;  %s2724_s27 = scalar_lea.vmem %s3525_s26, 1024  ;;  %p2731_p5 = scmp.lt.s32.totalorder %s3525_s26, %s2729_s8 }
 0x33c   : > { %p2725_p11 = scmp.ne.s32.totalorder %s3525_s26, %s2724_s27  ;;  %p2732_p7 = scmp.lt.s32.totalorder %s2730_s9, %s2724_s27 }
 0x33e   : > { %1729 = vrot.lane.b32.xlu1 %v2479_v16, %s2801_s29  ;;  %p2726_p13 = pnand %p2725_p11, %p3582_p12  ;;  %p2733_p8 = por %p2732_p7, %p2731_p5 }
 0x340   : > { %p2727_p4 = pneg %p2726_p13 }
 0x342   : > { %1793 = vrot.lane.b32.xlu1 %v2487_v17, %s2802_s30  ;;  %p2734_p10 = pnand %p2733_p8, %p2727_p4 }
 0x344   : > { %v1526_v19 = vpop.permute.xlu1 %1525 }
 0x345   : > { %v1400_v20 = vpop.permute.xlu0 %1399  ;;  %1548 = vst.msk [vmem:[#allocation3 + $0x4] sm:$0xf] %vm654_vm7, %v1526_v19 }
 0x346   : > { %1421 = vst.msk [vmem:[#allocation3 + $0x8] sm:$0xf] %vm491_vm5, %v1400_v20  ;;  %1857 = vrot.lane.b32.xlu1 %v2495_v21, %s2803_s11  ;;  %v2689_v21 = vld [vmem:[%s2922_s10 + $0x10] sm:$0xff]  ;;  %s3520_s11 = scalar_lea.hbm %s3574_s3, %s2496_s19 }
 0x348   : > { %v1590_v22 = vpop.permute.xlu1 %1589 }
 0x349   : > { %v1464_v23 = vpop.permute.xlu0 %1463  ;;  %1612 = vst.msk [vmem:[#allocation3 + $0x4] sm:$0xf] %vm735_vm8, %v1590_v22 }
 0x34a   : > { %1485 = vst.msk [vmem:[#allocation3 + $0x8] sm:$0xf] %vm572_vm6, %v1464_v23 }
 0x34c   : > { %v1654_v24 = vpop.permute.xlu1 %1653 }
 0x34d   : > { %v1716_v25 = vpop.permute.xlu0 %1715  ;;  %1676 = vst.msk [vmem:[#allocation3 + $0x4] sm:$0xf] %vm816_vm9, %v1654_v24  ;;  %v2690_v24 = vld [vmem:[%s2922_s10 + $0x28] sm:$0xff] }
 0x34e   : > { %1739 = vst.msk [vmem:[#allocation3] sm:$0xf] %vm898_vm10, %v1716_v25 }
 0x350   : > { %v1402_v41 = vpop.permute.xlu1 %1401 }
 0x351   : > { %v1780_v26 = vpop.permute.xlu0 %1779  ;;  %1422 = vst.msk [vmem:[#allocation3 + $0xc] sm:$0xf] %vm491_vm5, %v1402_v41 }
 0x352   : > { %1803 = vst.msk [vmem:[#allocation3] sm:$0xf] %vm979_vm11, %v1780_v26  ;;  %v2691_v26 = vld [vmem:[%s2922_s10 + $0x18] sm:$0xff] }
 0x354   : > { %v1466_v27 = vpop.permute.xlu1 %1465 }
 0x355   : > { %v1844_v28 = vpop.permute.xlu0 %1843  ;;  %1486 = vst.msk [vmem:[#allocation3 + $0xc] sm:$0xf] %vm572_vm6, %v1466_v27 }
 0x356   : > { %1867 = vst.msk [vmem:[#allocation3] sm:$0xf] %vm1060_vm12, %v1844_v28 }
 0x358   : > { %v1718_v29 = vpop.permute.xlu1 %1717 }
 0x359   : > { %v1528_v30 = vpop.permute.xlu0 %1527  ;;  %1740 = vst.msk [vmem:[#allocation3 + $0x4] sm:$0xf] %vm898_vm10, %v1718_v29  ;;  %v2692_v29 = vld [vmem:[%s2922_s10 + $0x40] sm:$0xff] }
 0x35a   : > { %1549 = vst.msk [vmem:[#allocation3 + $0x8] sm:$0xf] %vm654_vm7, %v1528_v30 }
 0x35c   : > { %v1782_v42 = vpop.permute.xlu1 %1781 }
 0x35d   : > { %v1592_v31 = vpop.permute.xlu0 %1591  ;;  %1804 = vst.msk [vmem:[#allocation3 + $0x4] sm:$0xf] %vm979_vm11, %v1782_v42 }
 0x35e   : > { %1613 = vst.msk [vmem:[#allocation3 + $0x8] sm:$0xf] %vm735_vm8, %v1592_v31  ;;  %v2693_v31 = vld [vmem:[%s2922_s10 + $0x30] sm:$0xff] }
 0x360   : > { %v1846_v32 = vpop.permute.xlu1 %1845 }
 0x361   : > { %v1656_v33 = vpop.permute.xlu0 %1655  ;;  %1868 = vst.msk [vmem:[#allocation3 + $0x4] sm:$0xf] %vm1060_vm12, %v1846_v32 }
 0x362   : > { %1677 = vst.msk [vmem:[#allocation3 + $0x8] sm:$0xf] %vm816_vm9, %v1656_v33 }
 0x364   : > { %v1530_v34 = vpop.permute.xlu1 %1529 }
 0x365   : > { %v1720_v35 = vpop.permute.xlu0 %1719  ;;  %1550 = vst.msk [vmem:[#allocation3 + $0xc] sm:$0xf] %vm654_vm7, %v1530_v34  ;;  %v2694_v34 = vld [vmem:[%s2922_s10 + $0x48] sm:$0xff] }
 0x366   : > { %1741 = vst.msk [vmem:[#allocation3 + $0x8] sm:$0xf] %vm898_vm10, %v1720_v35 }
 0x368   : > { %v1594_v36 = vpop.permute.xlu1 %1593  ;;  %v2639_v38 = vld [vmem:[#allocation3] sm:$0xff]  }
 0x369   : > { %v1784_v37 = vpop.permute.xlu0 %1783  ;;  %1614 = vst.msk [vmem:[#allocation3 + $0xc] sm:$0xf] %vm735_vm8, %v1594_v36  ;;  %2556 = vmatprep.mubr.msk.bf16.mxu1 %vm1142_vm13, %v2639_v38 }
 0x36a   : > { %1805 = vst.msk [vmem:[#allocation3 + $0x8] sm:$0xf] %vm979_vm11, %v1784_v37  ;;  %v2695_v37 = vld [vmem:[%s2922_s10 + $0x38] sm:$0xff] }
 0x36c   : > { %v1658_v39 = vpop.permute.xlu1 %1657 }
 0x36d   : > { %v1404_v40 = vpop.permute.xlu0 %1403  ;;  %1678 = vst.msk [vmem:[#allocation3 + $0xc] sm:$0xf] %vm816_vm9, %v1658_v39 }
 0x36e   : > { %1423 = vst.msk [vmem:[#allocation3 + $0x10] sm:$0xf] %vm491_vm5, %v1404_v40 }
 0x370   : > { %v1722_v43 = vpop.permute.xlu1 %1721 }
 0x371   : > { %v1848_v2 = vpop.permute.xlu0 %1847  ;;  %1742 = vst.msk [vmem:[#allocation3 + $0xc] sm:$0xf] %vm898_vm10, %v1722_v43 }
 0x372   : > { %1869 = vst.msk [vmem:[#allocation3 + $0x8] sm:$0xf] %vm1060_vm12, %v1848_v2 }
 0x374   : > { %v1786_v44 = vpop.permute.xlu1 %1785 }
 0x375   : > { %v1468_v47 = vpop.permute.xlu0 %1467  ;;  %1806 = vst.msk [vmem:[#allocation3 + $0xc] sm:$0xf] %vm979_vm11, %v1786_v44 }
 0x376   : > { %1487 = vst.msk [vmem:[#allocation3 + $0x10] sm:$0xf] %vm572_vm6, %v1468_v47 }
 0x378   : > { %v1406_v48 = vpop.permute.xlu1 %1405 }
 0x379   : > { %v1532_v49 = vpop.permute.xlu0 %1531  ;;  %1424 = vst.msk [vmem:[#allocation3 + $0x14] sm:$0xf] %vm491_vm5, %v1406_v48 }
 0x37a   : > { %1551 = vst.msk [vmem:[#allocation3 + $0x10] sm:$0xf] %vm654_vm7, %v1532_v49 }
 0x37c   : > { %v1850_v50 = vpop.permute.xlu1 %1849 }
 0x37d   : > { %v1596_v3 = vpop.permute.xlu0 %1595  ;;  %1870 = vst.msk [vmem:[#allocation3 + $0xc] sm:$0xf] %vm1060_vm12, %v1850_v50 }
 0x37e   : > { %1615 = vst.msk [vmem:[#allocation3 + $0x10] sm:$0xf] %vm735_vm8, %v1596_v3 }
 0x380   : > { %v1470_v51 = vpop.permute.xlu1 %1469 }
 0x381   : > { %v1660_v52 = vpop.permute.xlu0 %1659  ;;  %1488 = vst.msk [vmem:[#allocation3 + $0x14] sm:$0xf] %vm572_vm6, %v1470_v51 }
 0x382   : > { %1679 = vst.msk [vmem:[#allocation3 + $0x10] sm:$0xf] %vm816_vm9, %v1660_v52 }
 0x384   : > { %v1534_v53 = vpop.permute.xlu1 %1533  ;;  %v2645_v12 = vld [vmem:[#allocation3 + $0x8] sm:$0xff]  }
 0x385   : > { %v1408_v45 = vpop.permute.xlu0 %1407  ;;  %1552 = vst.msk [vmem:[#allocation3 + $0x14] sm:$0xf] %vm654_vm7, %v1534_v53  ;;  %2557 = vmatmul.mubr.msk.bf16.vlgmr.msra.gmra.mxu1 %vm1142_vm13, %v2645_v12 }
 0x386   : > { %1425 = vst.msk [vmem:[#allocation3 + $0x18] sm:$0xf] %vm491_vm5, %v1408_v45 }
 0x388   : > { %v1598_v56 = vpop.permute.xlu1 %1597 }
 0x389   : > { %v1472_v46 = vpop.permute.xlu0 %1471  ;;  %1616 = vst.msk [vmem:[#allocation3 + $0x14] sm:$0xf] %vm735_vm8, %v1598_v56 }
 0x38a   : > { %1489 = vst.msk [vmem:[#allocation3 + $0x18] sm:$0xf] %vm572_vm6, %v1472_v46 }
 0x38c   : > { %v1662_v57 = vpop.permute.xlu1 %1661 }
 0x38d   : > { %v1724_v58 = vpop.permute.xlu0 %1723  ;;  %1680 = vst.msk [vmem:[#allocation3 + $0x14] sm:$0xf] %vm816_vm9, %v1662_v57 }
 0x38e   : > { %1743 = vst.msk [vmem:[#allocation3 + $0x10] sm:$0xf] %vm898_vm10, %v1724_v58 }
 0x390   : > { %v1410_v59 = vpop.permute.xlu1 %1409 }
 0x391   : > { %v1788_v60 = vpop.permute.xlu0 %1787  ;;  %1426 = vst.msk [vmem:[#allocation3 + $0x1c] sm:$0xf] %vm491_vm5, %v1410_v59 }
 0x392   : > { %1807 = vst.msk [vmem:[#allocation3 + $0x10] sm:$0xf] %vm979_vm11, %v1788_v60 }
 0x394   : > { %v1474_v61 = vpop.permute.xlu1 %1473 }
 0x395   : > { %v1852_v62 = vpop.permute.xlu0 %1851  ;;  %1490 = vst.msk [vmem:[#allocation3 + $0x1c] sm:$0xf] %vm572_vm6, %v1474_v61 }
 0x396   : > { %1871 = vst.msk [vmem:[#allocation3 + $0x10] sm:$0xf] %vm1060_vm12, %v1852_v62 }
 0x398   : > { %v1726_v63 = vpop.permute.xlu1 %1725 }
 0x399   : > { %v1536_v0 = vpop.permute.xlu0 %1535  ;;  %1744 = vst.msk [vmem:[#allocation3 + $0x14] sm:$0xf] %vm898_vm10, %v1726_v63 }
 0x39a   : > { %1553 = vst.msk [vmem:[#allocation3 + $0x18] sm:$0xf] %vm654_vm7, %v1536_v0 }
 0x39c   : > { %v1790_v1 = vpop.permute.xlu1 %1789 }
 0x39d   : > { %v1600_v4 = vpop.permute.xlu0 %1599  ;;  %1808 = vst.msk [vmem:[#allocation3 + $0x14] sm:$0xf] %vm979_vm11, %v1790_v1 }
 0x39e   : > { %1617 = vst.msk [vmem:[#allocation3 + $0x18] sm:$0xf] %vm735_vm8, %v1600_v4 }
 0x3a0   : > { %v1854_v13 = vpop.permute.xlu1 %1853 }
 0x3a1   : > { %v1664_v5 = vpop.permute.xlu0 %1663  ;;  %1872 = vst.msk [vmem:[#allocation3 + $0x14] sm:$0xf] %vm1060_vm12, %v1854_v13 }
 0x3a2   : > { %1681 = vst.msk [vmem:[#allocation3 + $0x18] sm:$0xf] %vm816_vm9, %v1664_v5 }
 0x3a4   : > { %v1538_v14 = vpop.permute.xlu1 %1537 }
 0x3a5   : > { %v1728_v6 = vpop.permute.xlu0 %1727  ;;  %1554 = vst.msk [vmem:[#allocation3 + $0x1c] sm:$0xf] %vm654_vm7, %v1538_v14 }
 0x3a6   : > { %1745 = vst.msk [vmem:[#allocation3 + $0x18] sm:$0xf] %vm898_vm10, %v1728_v6 }
 0x3a8   : > { %v1602_v7 = vpop.permute.xlu1 %1601  ;;  %v2646_v9 = vld [vmem:[#allocation3 + $0x10] sm:$0xff]  }
 0x3a9   : > { %v1792_v8 = vpop.permute.xlu0 %1791  ;;  %1618 = vst.msk [vmem:[#allocation3 + $0x1c] sm:$0xf] %vm735_vm8, %v1602_v7  ;;  %2560 = vmatprep.mubr.msk.bf16.mxu1 %vm1142_vm13, %v2646_v9 }
 0x3aa   : > { %1809 = vst.msk [vmem:[#allocation3 + $0x18] sm:$0xf] %vm979_vm11, %v1792_v8 }
 0x3ac   : > { %v1666_v10 = vpop.permute.xlu1 %1665 }
 0x3ad   : > { %v1856_v11 = vpop.permute.xlu0 %1855  ;;  %1682 = vst.msk [vmem:[#allocation3 + $0x1c] sm:$0xf] %vm816_vm9, %v1666_v10 }
 0x3ae   : > { %1873 = vst.msk [vmem:[#allocation3 + $0x18] sm:$0xf] %vm1060_vm12, %v1856_v11 }
 0x3b0   : > { %v1730_v54 = vpop.permute.xlu1 %1729 }
 0x3b1   : > { %1746 = vst.msk [vmem:[#allocation3 + $0x1c] sm:$0xf] %vm898_vm10, %v1730_v54 }
 0x3b4   : > { %v1794_v15 = vpop.permute.xlu1 %1793 }
 0x3b5   : > { %1810 = vst.msk [vmem:[#allocation3 + $0x1c] sm:$0xf] %vm979_vm11, %v1794_v15 }
 0x3b8   : > { %v1858_v16 = vpop.permute.xlu1 %1857 }
 0x3b9   : > { %1874 = vst.msk [vmem:[#allocation3 + $0x1c] sm:$0xf] %vm1060_vm12, %v1858_v16 }
 0x3c0   : > { %v2647_v55 = vld [vmem:[#allocation3 + $0x18] sm:$0xff]  }
 0x3c1   : > { %2561 = vmatmul.mubr.msk.bf16.gmra.mxu1 %vm1142_vm13, %v2647_v55 }
 0x445   : > { %v2558_v17 = vpop.f32.mrf.mxu1 }
 0x446   : > { %v2021_v19 = vadd.f32 %v2688_v18, %v2558_v17 }
 0x447   : > { %v1988_v20 = vpop.f32.mrf.mxu1 }
 0x448   : > { %2030 = vst.msk [vmem:[%s3495_s17 + $0x10] sm:$0xff] %vm2027_vm14, %v2021_v19  ;;  %v2019_v22 = vadd.f32 %v2689_v21, %v1988_v20 }
 0x449   : > { %v2559_v23 = vpop.f32.mrf.mxu1 }
 0x44a   : > { %2028 = vst.msk [vmem:[%s3495_s17] sm:$0xff] %vm2027_vm14, %v2019_v22  ;;  %v2022_v25 = vadd.f32 %v2690_v24, %v2559_v23 }
 0x44b   : > { %v1991_v41 = vpop.f32.mrf.mxu1 }
 0x44c   : > { %2031 = vst.msk [vmem:[%s3495_s17 + $0x18] sm:$0xff] %vm2027_vm14, %v2022_v25  ;;  %v2020_v27 = vadd.f32 %v2691_v26, %v1991_v41 }
 0x44e   : > { %2029 = vst.msk [vmem:[%s3495_s17 + $0x8] sm:$0xff] %vm2027_vm14, %v2020_v27 }
 0x481   : > { %v2562_v28 = vpop.f32.mrf.mxu1 }
 0x482   : > { %v2025_v30 = vadd.f32 %v2692_v29, %v2562_v28 }
 0x483   : > { %v2004_v42 = vpop.f32.mrf.mxu1 }
 0x484   : > { %2034 = vst.msk [vmem:[%s3495_s17 + $0x30] sm:$0xff] %vm2027_vm14, %v2025_v30  ;;  %v2023_v32 = vadd.f32 %v2693_v31, %v2004_v42 }
 0x485   : > { %v2563_v33 = vpop.f32.mrf.mxu1 }
 0x486   : > { %2032 = vst.msk [vmem:[%s3495_s17 + $0x20] sm:$0xff] %vm2027_vm14, %v2023_v32  ;;  %v2026_v35 = vadd.f32 %v2694_v34, %v2563_v33 }
 0x487   : > { %v2007_v36 = vpop.f32.mrf.mxu1 }
 0x488   : > { %2035 = vst.msk [vmem:[%s3495_s17 + $0x38] sm:$0xff] %vm2027_vm14, %v2026_v35  ;;  %v2024_v38 = vadd.f32 %v2695_v37, %v2007_v36 }
 0x48a   : > { %2033 = vst.msk [vmem:[%s3495_s17 + $0x28] sm:$0xff] %vm2027_vm14, %v2024_v38 }
 0x48b   : > { %2737 = shalt.err (!%p2734_p10)
}
 0x48c   : > { %s2738_s10 = scalar_lea.hbm %s3520_s11, 1024  ;;  %s2742_s20 = scalar_lea.hbm %s3574_s3, 2048 }
 0x48d   : > { %p2739_p0 = scmp.ne.s32.totalorder %s3520_s11, %s2738_s10  ;;  %p2743_p1 = scmp.lt.s32.totalorder %s3520_s11, %s3574_s3 }
 0x48e   : > { %p2744_p3 = scmp.lt.s32.totalorder %s2742_s20, %s2738_s10 }
 0x48f   : > { %p2740_p2 = pnand %p2739_p0, %p3582_p12 }
 0x490   : > { %p2745_p6 = por %p2744_p3, %p2743_p1 }
 0x491   : > { %p2741_p9 = pneg %p2740_p2 }
 0x493   : > { %p2746_p11 = pnand %p2745_p6, %p2741_p9 }
 0x495   : > { %2749 = shalt.err (!%p2746_p11)
}
 0x496   : > { %s2806_s17 = smov 128  }
 0x497   : > { %2570 = dma.vmem_to_hbm [thread:$0]  (%p3582_p12), %s3525_s26, 1024, %s3520_s11, %s2037_s16, %s2806_s17, %s2806_s17, %s2796_s4  }
 0x498 PF: > { %s2065_s19 = sand.u32 1, %s2776_s12   ;;  %p3583_p13 = scmp.ne.s32.totalorder %s3579_s24, 0 }
 0x499   : > { %p3584_p4 = scmp.ge.s32.totalorder %s2788_s15, 2  ;;  %s2066_s29 = scalar_lea.sflag [#allocation6], %s2065_s19 }
 0x49b   : > { %p2577_p5 = pnand %p3584_p4, %p3583_p13 }
 0x49d   : > { %p2578_p7 = pneg %p2577_p5 }
 0x49f   : > { %2771 = dma.done.wait (%p2578_p7), %s2066_s29, 1024  }
 0x4a0   : > { %2773 = vsyncadd (%p2578_p7), %s2066_s29, 4294966272  ;;  %p16_p8 = scmp.ge.s32.totalorder %s2852_s18, 4   ;;  %s3585_s12 = smov %s2780_s13 }
 0x4a1   : > { %s3586_s13 = smov %s2784_s14  ;;  %s3587_s14 = smov %s2864_s21 }
 0x4a2   : > { %s3588_s15 = smov %s2852_s18  ;;  %18 = sbr.rel (!%p16_p8) target bundleno = 5 (0x5), region = 79 }
 0x4a7   :  { %2071 = vsyncpa [#allocation5], 1 }
 0x4a8   :  { %2073 = vsyncpa [#allocation5 + $0x1], 1 }
 0x4a9   :  { %2074 = vsyncpa [#allocation6], 1 }
 0x4aa   :  { %2076 = vsyncpa [#allocation6 + $0x1], 1 }

</bundles_post_ra>
